<compile_context>
chip_gen: v6e
topology: v6e:2x2x1
jax: 0.10.0
libtpu: 0.0.40
codegen_flags: <defaults>
</compile_context>

<pallas_src>
import jax
import jax.numpy as jnp
from jax.experimental import pallas as pl
from jax.experimental.pallas import tpu as pltpu


def _round_up(x, m):
    return (x + m - 1) // m * m


def gru_kernel(gx_ref, whh_ref, bhn_ref, full_ref, h_ref):
    """One (batch-tile, time-chunk) grid step of the GRU recurrence.

    gx_ref   : (TT, BB, 3*Hp) f32  precomputed x @ W_ih^T + (b_ih [+ b_hh for r,z])
    whh_ref  : (Hp, 3*Hp)     bf16 [W_hr^T | W_hz^T | W_hn^T] lane-concatenated
    bhn_ref  : (1, Hp)        f32  b_hn (must stay inside r * (...))
    full_ref : (BB, TT, Hp)   f32  batch-first output block
    h_ref    : (BB, Hp)       f32  hidden-state carry (scratch, persists over chunks)
    """
    c = pl.program_id(1)  # time-chunk index (sequential / "arbitrary" axis)

    @pl.when(c == 0)
    def _():
        h_ref[...] = jnp.zeros_like(h_ref)

    Hp = h_ref.shape[1]
    TT = gx_ref.shape[0]

    whh = whh_ref[...]          # resident constant weight (bf16)
    bhn = bhn_ref[...]          # (1, Hp)
    h = h_ref[...]              # f32 carry

    # Static unroll over the time chunk: one fused MXU matmul per timestep,
    # gate elementwise math kept in f32 (v5e VPU/EUP have no bf16 path).
    for lt in range(TT):
        gx = gx_ref[lt]                                         # (BB, 3Hp) f32
        hg = jnp.dot(h.astype(jnp.bfloat16), whh,
                     preferred_element_type=jnp.float32)        # (BB, 3Hp) f32
        r = jax.nn.sigmoid(gx[:, :Hp] + hg[:, :Hp])
        z = jax.nn.sigmoid(gx[:, Hp:2 * Hp] + hg[:, Hp:2 * Hp])
        n = jnp.tanh(gx[:, 2 * Hp:] + r * (hg[:, 2 * Hp:] + bhn))
        h = (1.0 - z) * n + z * h
        full_ref[:, lt, :] = h.astype(full_ref.dtype)

    h_ref[...] = h


def gru_forward(x, w_ih, w_hh, b_ih, b_hh):
    """x: (B, T, I) batch-first (PyTorch). w_ih: (3H, I), w_hh: (3H, H),
    b_ih/b_hh: (3H,) in PyTorch gate order [r, z, n].
    Returns (full (B, T, H), last (1, B, H)) like nn.GRU(batch_first=True)."""
    B, T, I = x.shape
    H = w_hh.shape[1]
    f32 = jnp.float32

    # ---- padded / tiled sizes ------------------------------------------------
    Hp = _round_up(H, 128)            # lane-dense hidden width
    Bp = _round_up(B, 8)              # sublane-aligned batch
    if T <= 32:
        Tp = _round_up(T, 8)
        TT = Tp
    else:
        TT = 32
        Tp = _round_up(T, TT)
    # Split padded batch into two tiles when possible (both TensorCores on v7x).
    BB = Bp // 2 if (Bp % 16 == 0) else Bp
    nb = Bp // BB
    nc = Tp // TT

    w_ih = w_ih.astype(f32)
    w_hh = w_hh.astype(f32)
    b_ih = b_ih.astype(f32)
    b_hh = b_hh.astype(f32)

    wih = [w_ih[g * H:(g + 1) * H] for g in range(3)]   # (H, I) each, order r,z,n
    whh = [w_hh[g * H:(g + 1) * H] for g in range(3)]   # (H, H)
    bih = [b_ih[g * H:(g + 1) * H] for g in range(3)]
    bhh = [b_hh[g * H:(g + 1) * H] for g in range(3)]

    pad_rows = lambda a: jnp.pad(a, ((0, Hp - H), (0, 0)))
    pad_vec = lambda v: jnp.pad(v, (0, Hp - H))

    # ---- hoisted input projection: one big GEMM outside the recurrence ------
    wih_cat = jnp.concatenate([pad_rows(w) for w in wih], axis=0)       # (3Hp, I)
    # fold b_hh into r/z lanes; b_hn must stay separate (inside r * (...))
    b_gx = jnp.concatenate([pad_vec(bih[0] + bhh[0]),
                            pad_vec(bih[1] + bhh[1]),
                            pad_vec(bih[2])])                           # (3Hp,)
    x_pad = jnp.pad(x.astype(f32), ((0, Bp - B), (0, Tp - T), (0, 0)))  # (Bp,Tp,I)
    # time-major gate tensor; the layout change is fused into the GEMM by XLA
    gates_x = jnp.einsum('bti,gi->tbg', x_pad, wih_cat) + b_gx          # (Tp,Bp,3Hp)

    # ---- fused, padded, bf16 recurrent weight (h @ W layout) -----------------
    pad_hh = lambda w: jnp.pad(w.T, ((0, Hp - H), (0, Hp - H)))         # (Hp, Hp)
    whh_cat = jnp.concatenate([pad_hh(w) for w in whh],
                              axis=1).astype(jnp.bfloat16)              # (Hp, 3Hp)
    bhn = pad_vec(bhh[2]).reshape(1, Hp)                                # (1, Hp)

    # NOTE: for very large H on v7x (64 MiB VMEM) the constant weight/bias specs
    # should be single-buffered via pipeline_mode=pl.Buffered(1); at these sizes
    # the default double buffering is a few hundred KiB and irrelevant.
    full_pad = pl.pallas_call(
        gru_kernel,
        out_shape=jax.ShapeDtypeStruct((Bp, Tp, Hp), f32),
        grid_spec=pltpu.PrefetchScalarGridSpec(
            num_scalar_prefetch=0,
            grid=(nb, nc),
            in_specs=[
                pl.BlockSpec((TT, BB, 3 * Hp), lambda b, c: (c, b, 0)),  # gates chunk
                pl.BlockSpec((Hp, 3 * Hp), lambda b, c: (0, 0)),         # W_hh (const)
                pl.BlockSpec((1, Hp), lambda b, c: (0, 0)),              # b_hn (const)
            ],
            out_specs=pl.BlockSpec((BB, TT, Hp), lambda b, c: (b, c, 0)),
            scratch_shapes=[pltpu.VMEM((BB, Hp), f32)],                  # h carry
        ),
        compiler_params=pltpu.CompilerParams(
            dimension_semantics=("parallel", "arbitrary"),
            vmem_limit_bytes=32 * 1024 * 1024,
        ),
    )(gates_x, whh_cat, bhn)

    full = full_pad[:B, :T, :H]          # (B, T, H) batch-first, no transpose pass
    last = full[:, T - 1, :][None]       # (1, B, H) == h_n
    return full, last


def gru_reference(x_btI, w_ih, w_hh, b_ih, b_hh):
    """Pure-JAX f32 reference implementing PyTorch GRU cell semantics."""
    B, T, I = x_btI.shape
    H = w_hh.shape[1]
    wih_r, wih_z, wih_n = (w_ih[0:H], w_ih[H:2 * H], w_ih[2 * H:3 * H])
    whh_r, whh_z, whh_n = (w_hh[0:H], w_hh[H:2 * H], w_hh[2 * H:3 * H])
    bih_r, bih_z, bih_n = (b_ih[0:H], b_ih[H:2 * H], b_ih[2 * H:3 * H])
    bhh_r, bhh_z, bhh_n = (b_hh[0:H], b_hh[H:2 * H], b_hh[2 * H:3 * H])

    def step(h, x_t):
        r = jax.nn.sigmoid(x_t @ wih_r.T + bih_r + h @ whh_r.T + bhh_r)
        z = jax.nn.sigmoid(x_t @ wih_z.T + bih_z + h @ whh_z.T + bhh_z)
        n = jnp.tanh(x_t @ wih_n.T + bih_n + r * (h @ whh_n.T + bhh_n))
        h_new = (1.0 - z) * n + z * h
        return h_new, h_new

    h0 = jnp.zeros((B, H), jnp.float32)
    x_tbi = jnp.transpose(x_btI, (1, 0, 2))
    h_last, full_tbh = jax.lax.scan(step, h0, x_tbi)
    return jnp.transpose(full_tbh, (1, 0, 2)), h_last.reshape(1, B, H)


if __name__ == "__main__":
    # shapes implied by the module: inputs (B, T, input_size)
    B, T, I, H = 4, 8, 16, 32

    key = jax.random.PRNGKey(0)
    k_x, k_wih, k_whh, k_bih, k_bhh = jax.random.split(key, 5)

    x = jax.random.normal(k_x, (B, T, I), dtype=jnp.float32)

    # PyTorch nn.GRU init: uniform(-1/sqrt(H), 1/sqrt(H))
    bound = 1.0 / (H ** 0.5)
    w_ih = jax.random.uniform(k_wih, (3 * H, I), jnp.float32, -bound, bound)
    w_hh = jax.random.uniform(k_whh, (3 * H, H), jnp.float32, -bound, bound)
    b_ih = jax.random.uniform(k_bih, (3 * H,), jnp.float32, -bound, bound)
    b_hh = jax.random.uniform(k_bhh, (3 * H,), jnp.float32, -bound, bound)

    full, last = gru_forward(x, w_ih, w_hh, b_ih, b_hh)
    jax.block_until_ready((full, last))

    full_ref, last_ref = gru_reference(x, w_ih, w_hh, b_ih, b_hh)
    assert full.shape == (B, T, H) and last.shape == (1, B, H)
    # recurrent matmul runs in bf16 (f32 accumulation) -> loosened tolerance
    assert jnp.allclose(full, full_ref, rtol=2e-2, atol=2e-2), \
        float(jnp.max(jnp.abs(full - full_ref)))
    assert jnp.allclose(last, last_ref, rtol=2e-2, atol=2e-2)

    print("KERNEL_OK")
</pallas_src>

<mosaic_0001>
module attributes {stable_mosaic.version = 11 : i64} {
  func.func @gru_kernel(%arg0: i32, %arg1: i32, %arg2: memref<8x8x384xf32, #tpu.memory_space<vmem>>, %arg3: memref<128x384xbf16, #tpu.memory_space<vmem>>, %arg4: memref<1x128xf32, #tpu.memory_space<vmem>>, %arg5: memref<8x8x128xf32, #tpu.memory_space<vmem>>, %arg6: memref<8x128xf32, #tpu.memory_space<vmem>>) attributes {dimension_semantics = [#tpu.dimension_semantics<parallel>, #tpu.dimension_semantics<arbitrary>], iteration_bounds = array<i64: 1, 1>, scalar_prefetch = 0 : i64, scratch_operands = 1 : i64, tpu.core_type = #tpu.core_type<tc>, window_params = [{transform_indices = @transform_0, window_bounds = array<i64: 8, 8, 384>}, {pipeline_mode = #tpu.pipeline_mode<synchronous>, transform_indices = @transform_1, window_bounds = array<i64: 128, 384>}, {pipeline_mode = #tpu.pipeline_mode<synchronous>, transform_indices = @transform_2, window_bounds = array<i64: 1, 128>}, {transform_indices = @transform_3, window_bounds = array<i64: 8, 8, 128>}]} {
    %c0_i32 = arith.constant 0 : i32
    %0 = arith.cmpi eq, %arg1, %c0_i32 : i32
    %1 = arith.extui %0 : i1 to i32
    %c0_i32_0 = arith.constant 0 : i32
    %2 = arith.cmpi ne, %1, %c0_i32_0 : i32
    scf.if %2 {
      %cst_80 = arith.constant 0.000000e+00 : f32
      %287 = vector.broadcast %cst_80 : f32 to vector<8x128xf32>
      %c0_81 = arith.constant 0 : index
      %c0_82 = arith.constant 0 : index
      %288 = vector.load %arg6[%c0_81, %c0_82] : memref<8x128xf32, #tpu.memory_space<vmem>>, vector<8x128xf32>
      tpu.vector_store %arg6[%c0_81, %c0_82], %287 {strides = array<i32>} : memref<8x128xf32, #tpu.memory_space<vmem>>, vector<8x128xf32>,
    } else {
    }
    %c0 = arith.constant 0 : index
    %c0_1 = arith.constant 0 : index
    %3 = vector.load %arg3[%c0, %c0_1] : memref<128x384xbf16, #tpu.memory_space<vmem>>, vector<128x384xbf16>
    %c0_2 = arith.constant 0 : index
    %c0_3 = arith.constant 0 : index
    %4 = vector.load %arg4[%c0_2, %c0_3] : memref<1x128xf32, #tpu.memory_space<vmem>>, vector<1x128xf32>
    %c0_4 = arith.constant 0 : index
    %c0_5 = arith.constant 0 : index
    %5 = vector.load %arg6[%c0_4, %c0_5] : memref<8x128xf32, #tpu.memory_space<vmem>>, vector<8x128xf32>
    %c0_6 = arith.constant 0 : index
    %c0_7 = arith.constant 0 : index
    %c0_8 = arith.constant 0 : index
    %6 = vector.load %arg2[%c0_6, %c0_7, %c0_8] : memref<8x8x384xf32, #tpu.memory_space<vmem>>, vector<1x8x384xf32>
    %7 = vector.shape_cast %6 : vector<1x8x384xf32> to vector<8x384xf32>
    %8 = arith.truncf %5 : vector<8x128xf32> to vector<8x128xbf16>
    %cst = arith.constant dense<0.000000e+00> : vector<8x384xf32>
    %9 = tpu.matmul %8, %3, %cst {dimension_numbers = #tpu.dot_dimension_numbers<[1], [0], [0], [1], [0, 0, 1, 1], [], []>} : vector<8x128xbf16>, vector<128x384xbf16>, vector<8x384xf32> -> vector<8x384xf32>
    %10 = vector.extract_strided_slice %7 {offsets = [0, 0], sizes = [8, 128], strides = [1, 1]} : vector<8x384xf32> to vector<8x128xf32>
    %11 = vector.extract_strided_slice %9 {offsets = [0, 0], sizes = [8, 128], strides = [1, 1]} : vector<8x384xf32> to vector<8x128xf32>
    %12 = arith.addf %10, %11 : vector<8x128xf32>
    %13 = arith.negf %12 : vector<8x128xf32>
    %14 = math.exp %13 : vector<8x128xf32>
    %cst_9 = arith.constant 1.000000e+00 : f32
    %15 = vector.broadcast %cst_9 : f32 to vector<8x128xf32>
    %16 = arith.addf %15, %14 : vector<8x128xf32>
    %17 = arith.divf %15, %16 : vector<8x128xf32>
    %18 = vector.extract_strided_slice %7 {offsets = [0, 128], sizes = [8, 128], strides = [1, 1]} : vector<8x384xf32> to vector<8x128xf32>
    %19 = vector.extract_strided_slice %9 {offsets = [0, 128], sizes = [8, 128], strides = [1, 1]} : vector<8x384xf32> to vector<8x128xf32>
    %20 = arith.addf %18, %19 : vector<8x128xf32>
    %21 = arith.negf %20 : vector<8x128xf32>
    %22 = math.exp %21 : vector<8x128xf32>
    %cst_10 = arith.constant 1.000000e+00 : f32
    %23 = vector.broadcast %cst_10 : f32 to vector<8x128xf32>
    %24 = arith.addf %23, %22 : vector<8x128xf32>
    %25 = arith.divf %23, %24 : vector<8x128xf32>
    %26 = vector.extract_strided_slice %7 {offsets = [0, 256], sizes = [8, 128], strides = [1, 1]} : vector<8x384xf32> to vector<8x128xf32>
    %27 = vector.extract_strided_slice %9 {offsets = [0, 256], sizes = [8, 128], strides = [1, 1]} : vector<8x384xf32> to vector<8x128xf32>
    %28 = vector.broadcast %4 : vector<1x128xf32> to vector<8x128xf32>
    %29 = arith.addf %27, %28 : vector<8x128xf32>
    %30 = arith.mulf %17, %29 : vector<8x128xf32>
    %31 = arith.addf %26, %30 : vector<8x128xf32>
    %32 = math.tanh %31 : vector<8x128xf32>
    %cst_11 = arith.constant 1.000000e+00 : f32
    %33 = vector.broadcast %cst_11 : f32 to vector<8x128xf32>
    %34 = arith.subf %33, %25 : vector<8x128xf32>
    %35 = arith.mulf %34, %32 : vector<8x128xf32>
    %36 = arith.mulf %25, %5 : vector<8x128xf32>
    %37 = arith.addf %35, %36 : vector<8x128xf32>
    %c0_12 = arith.constant 0 : index
    %c0_13 = arith.constant 0 : index
    %c0_14 = arith.constant 0 : index
    %38 = vector.load %arg5[%c0_12, %c0_13, %c0_14] : memref<8x8x128xf32, #tpu.memory_space<vmem>>, vector<8x1x128xf32>
    %39 = vector.shape_cast %38 : vector<8x1x128xf32> to vector<8x128xf32>
    %40 = vector.shape_cast %37 : vector<8x128xf32> to vector<8x1x128xf32>
    tpu.vector_store %arg5[%c0_12, %c0_13, %c0_14], %40 {strides = array<i32>} : memref<8x8x128xf32, #tpu.memory_space<vmem>>, vector<8x1x128xf32>,
    %c1 = arith.constant 1 : index
    %c0_15 = arith.constant 0 : index
    %c0_16 = arith.constant 0 : index
    %41 = vector.load %arg2[%c1, %c0_15, %c0_16] : memref<8x8x384xf32, #tpu.memory_space<vmem>>, vector<1x8x384xf32>
    %42 = vector.shape_cast %41 : vector<1x8x384xf32> to vector<8x384xf32>
    %43 = arith.truncf %37 : vector<8x128xf32> to vector<8x128xbf16>
    %cst_17 = arith.constant dense<0.000000e+00> : vector<8x384xf32>
    %44 = tpu.matmul %43, %3, %cst_17 {dimension_numbers = #tpu.dot_dimension_numbers<[1], [0], [0], [1], [0, 0, 1, 1], [], []>} : vector<8x128xbf16>, vector<128x384xbf16>, vector<8x384xf32> -> vector<8x384xf32>
    %45 = vector.extract_strided_slice %42 {offsets = [0, 0], sizes = [8, 128], strides = [1, 1]} : vector<8x384xf32> to vector<8x128xf32>
    %46 = vector.extract_strided_slice %44 {offsets = [0, 0], sizes = [8, 128], strides = [1, 1]} : vector<8x384xf32> to vector<8x128xf32>
    %47 = arith.addf %45, %46 : vector<8x128xf32>
    %48 = arith.negf %47 : vector<8x128xf32>
    %49 = math.exp %48 : vector<8x128xf32>
    %cst_18 = arith.constant 1.000000e+00 : f32
    %50 = vector.broadcast %cst_18 : f32 to vector<8x128xf32>
    %51 = arith.addf %50, %49 : vector<8x128xf32>
    %52 = arith.divf %50, %51 : vector<8x128xf32>
    %53 = vector.extract_strided_slice %42 {offsets = [0, 128], sizes = [8, 128], strides = [1, 1]} : vector<8x384xf32> to vector<8x128xf32>
    %54 = vector.extract_strided_slice %44 {offsets = [0, 128], sizes = [8, 128], strides = [1, 1]} : vector<8x384xf32> to vector<8x128xf32>
    %55 = arith.addf %53, %54 : vector<8x128xf32>
    %56 = arith.negf %55 : vector<8x128xf32>
    %57 = math.exp %56 : vector<8x128xf32>
    %cst_19 = arith.constant 1.000000e+00 : f32
    %58 = vector.broadcast %cst_19 : f32 to vector<8x128xf32>
    %59 = arith.addf %58, %57 : vector<8x128xf32>
    %60 = arith.divf %58, %59 : vector<8x128xf32>
    %61 = vector.extract_strided_slice %42 {offsets = [0, 256], sizes = [8, 128], strides = [1, 1]} : vector<8x384xf32> to vector<8x128xf32>
    %62 = vector.extract_strided_slice %44 {offsets = [0, 256], sizes = [8, 128], strides = [1, 1]} : vector<8x384xf32> to vector<8x128xf32>
    %63 = vector.broadcast %4 : vector<1x128xf32> to vector<8x128xf32>
    %64 = arith.addf %62, %63 : vector<8x128xf32>
    %65 = arith.mulf %52, %64 : vector<8x128xf32>
    %66 = arith.addf %61, %65 : vector<8x128xf32>
    %67 = math.tanh %66 : vector<8x128xf32>
    %cst_20 = arith.constant 1.000000e+00 : f32
    %68 = vector.broadcast %cst_20 : f32 to vector<8x128xf32>
    %69 = arith.subf %68, %60 : vector<8x128xf32>
    %70 = arith.mulf %69, %67 : vector<8x128xf32>
    %71 = arith.mulf %60, %37 : vector<8x128xf32>
    %72 = arith.addf %70, %71 : vector<8x128xf32>
    %c0_21 = arith.constant 0 : index
    %c1_22 = arith.constant 1 : index
    %c0_23 = arith.constant 0 : index
    %73 = vector.load %arg5[%c0_21, %c1_22, %c0_23] : memref<8x8x128xf32, #tpu.memory_space<vmem>>, vector<8x1x128xf32>
    %74 = vector.shape_cast %73 : vector<8x1x128xf32> to vector<8x128xf32>
    %75 = vector.shape_cast %72 : vector<8x128xf32> to vector<8x1x128xf32>
    tpu.vector_store %arg5[%c0_21, %c1_22, %c0_23], %75 {strides = array<i32>} : memref<8x8x128xf32, #tpu.memory_space<vmem>>, vector<8x1x128xf32>,
    %c2 = arith.constant 2 : index
    %c0_24 = arith.constant 0 : index
    %c0_25 = arith.constant 0 : index
    %76 = vector.load %arg2[%c2, %c0_24, %c0_25] : memref<8x8x384xf32, #tpu.memory_space<vmem>>, vector<1x8x384xf32>
    %77 = vector.shape_cast %76 : vector<1x8x384xf32> to vector<8x384xf32>
    %78 = arith.truncf %72 : vector<8x128xf32> to vector<8x128xbf16>
    %cst_26 = arith.constant dense<0.000000e+00> : vector<8x384xf32>
    %79 = tpu.matmul %78, %3, %cst_26 {dimension_numbers = #tpu.dot_dimension_numbers<[1], [0], [0], [1], [0, 0, 1, 1], [], []>} : vector<8x128xbf16>, vector<128x384xbf16>, vector<8x384xf32> -> vector<8x384xf32>
    %80 = vector.extract_strided_slice %77 {offsets = [0, 0], sizes = [8, 128], strides = [1, 1]} : vector<8x384xf32> to vector<8x128xf32>
    %81 = vector.extract_strided_slice %79 {offsets = [0, 0], sizes = [8, 128], strides = [1, 1]} : vector<8x384xf32> to vector<8x128xf32>
    %82 = arith.addf %80, %81 : vector<8x128xf32>
    %83 = arith.negf %82 : vector<8x128xf32>
    %84 = math.exp %83 : vector<8x128xf32>
    %cst_27 = arith.constant 1.000000e+00 : f32
    %85 = vector.broadcast %cst_27 : f32 to vector<8x128xf32>
    %86 = arith.addf %85, %84 : vector<8x128xf32>
    %87 = arith.divf %85, %86 : vector<8x128xf32>
    %88 = vector.extract_strided_slice %77 {offsets = [0, 128], sizes = [8, 128], strides = [1, 1]} : vector<8x384xf32> to vector<8x128xf32>
    %89 = vector.extract_strided_slice %79 {offsets = [0, 128], sizes = [8, 128], strides = [1, 1]} : vector<8x384xf32> to vector<8x128xf32>
    %90 = arith.addf %88, %89 : vector<8x128xf32>
    %91 = arith.negf %90 : vector<8x128xf32>
    %92 = math.exp %91 : vector<8x128xf32>
    %cst_28 = arith.constant 1.000000e+00 : f32
    %93 = vector.broadcast %cst_28 : f32 to vector<8x128xf32>
    %94 = arith.addf %93, %92 : vector<8x128xf32>
    %95 = arith.divf %93, %94 : vector<8x128xf32>
    %96 = vector.extract_strided_slice %77 {offsets = [0, 256], sizes = [8, 128], strides = [1, 1]} : vector<8x384xf32> to vector<8x128xf32>
    %97 = vector.extract_strided_slice %79 {offsets = [0, 256], sizes = [8, 128], strides = [1, 1]} : vector<8x384xf32> to vector<8x128xf32>
    %98 = vector.broadcast %4 : vector<1x128xf32> to vector<8x128xf32>
    %99 = arith.addf %97, %98 : vector<8x128xf32>
    %100 = arith.mulf %87, %99 : vector<8x128xf32>
    %101 = arith.addf %96, %100 : vector<8x128xf32>
    %102 = math.tanh %101 : vector<8x128xf32>
    %cst_29 = arith.constant 1.000000e+00 : f32
    %103 = vector.broadcast %cst_29 : f32 to vector<8x128xf32>
    %104 = arith.subf %103, %95 : vector<8x128xf32>
    %105 = arith.mulf %104, %102 : vector<8x128xf32>
    %106 = arith.mulf %95, %72 : vector<8x128xf32>
    %107 = arith.addf %105, %106 : vector<8x128xf32>
    %c0_30 = arith.constant 0 : index
    %c2_31 = arith.constant 2 : index
    %c0_32 = arith.constant 0 : index
    %108 = vector.load %arg5[%c0_30, %c2_31, %c0_32] : memref<8x8x128xf32, #tpu.memory_space<vmem>>, vector<8x1x128xf32>
    %109 = vector.shape_cast %108 : vector<8x1x128xf32> to vector<8x128xf32>
    %110 = vector.shape_cast %107 : vector<8x128xf32> to vector<8x1x128xf32>
    tpu.vector_store %arg5[%c0_30, %c2_31, %c0_32], %110 {strides = array<i32>} : memref<8x8x128xf32, #tpu.memory_space<vmem>>, vector<8x1x128xf32>,
    %c3 = arith.constant 3 : index
    %c0_33 = arith.constant 0 : index
    %c0_34 = arith.constant 0 : index
    %111 = vector.load %arg2[%c3, %c0_33, %c0_34] : memref<8x8x384xf32, #tpu.memory_space<vmem>>, vector<1x8x384xf32>
    %112 = vector.shape_cast %111 : vector<1x8x384xf32> to vector<8x384xf32>
    %113 = arith.truncf %107 : vector<8x128xf32> to vector<8x128xbf16>
    %cst_35 = arith.constant dense<0.000000e+00> : vector<8x384xf32>
    %114 = tpu.matmul %113, %3, %cst_35 {dimension_numbers = #tpu.dot_dimension_numbers<[1], [0], [0], [1], [0, 0, 1, 1], [], []>} : vector<8x128xbf16>, vector<128x384xbf16>, vector<8x384xf32> -> vector<8x384xf32>
    %115 = vector.extract_strided_slice %112 {offsets = [0, 0], sizes = [8, 128], strides = [1, 1]} : vector<8x384xf32> to vector<8x128xf32>
    %116 = vector.extract_strided_slice %114 {offsets = [0, 0], sizes = [8, 128], strides = [1, 1]} : vector<8x384xf32> to vector<8x128xf32>
    %117 = arith.addf %115, %116 : vector<8x128xf32>
    %118 = arith.negf %117 : vector<8x128xf32>
    %119 = math.exp %118 : vector<8x128xf32>
    %cst_36 = arith.constant 1.000000e+00 : f32
    %120 = vector.broadcast %cst_36 : f32 to vector<8x128xf32>
    %121 = arith.addf %120, %119 : vector<8x128xf32>
    %122 = arith.divf %120, %121 : vector<8x128xf32>
    %123 = vector.extract_strided_slice %112 {offsets = [0, 128], sizes = [8, 128], strides = [1, 1]} : vector<8x384xf32> to vector<8x128xf32>
    %124 = vector.extract_strided_slice %114 {offsets = [0, 128], sizes = [8, 128], strides = [1, 1]} : vector<8x384xf32> to vector<8x128xf32>
    %125 = arith.addf %123, %124 : vector<8x128xf32>
    %126 = arith.negf %125 : vector<8x128xf32>
    %127 = math.exp %126 : vector<8x128xf32>
    %cst_37 = arith.constant 1.000000e+00 : f32
    %128 = vector.broadcast %cst_37 : f32 to vector<8x128xf32>
    %129 = arith.addf %128, %127 : vector<8x128xf32>
    %130 = arith.divf %128, %129 : vector<8x128xf32>
    %131 = vector.extract_strided_slice %112 {offsets = [0, 256], sizes = [8, 128], strides = [1, 1]} : vector<8x384xf32> to vector<8x128xf32>
    %132 = vector.extract_strided_slice %114 {offsets = [0, 256], sizes = [8, 128], strides = [1, 1]} : vector<8x384xf32> to vector<8x128xf32>
    %133 = vector.broadcast %4 : vector<1x128xf32> to vector<8x128xf32>
    %134 = arith.addf %132, %133 : vector<8x128xf32>
    %135 = arith.mulf %122, %134 : vector<8x128xf32>
    %136 = arith.addf %131, %135 : vector<8x128xf32>
    %137 = math.tanh %136 : vector<8x128xf32>
    %cst_38 = arith.constant 1.000000e+00 : f32
    %138 = vector.broadcast %cst_38 : f32 to vector<8x128xf32>
    %139 = arith.subf %138, %130 : vector<8x128xf32>
    %140 = arith.mulf %139, %137 : vector<8x128xf32>
    %141 = arith.mulf %130, %107 : vector<8x128xf32>
    %142 = arith.addf %140, %141 : vector<8x128xf32>
    %c0_39 = arith.constant 0 : index
    %c3_40 = arith.constant 3 : index
    %c0_41 = arith.constant 0 : index
    %143 = vector.load %arg5[%c0_39, %c3_40, %c0_41] : memref<8x8x128xf32, #tpu.memory_space<vmem>>, vector<8x1x128xf32>
    %144 = vector.shape_cast %143 : vector<8x1x128xf32> to vector<8x128xf32>
    %145 = vector.shape_cast %142 : vector<8x128xf32> to vector<8x1x128xf32>
    tpu.vector_store %arg5[%c0_39, %c3_40, %c0_41], %145 {strides = array<i32>} : memref<8x8x128xf32, #tpu.memory_space<vmem>>, vector<8x1x128xf32>,
    %c4 = arith.constant 4 : index
    %c0_42 = arith.constant 0 : index
    %c0_43 = arith.constant 0 : index
    %146 = vector.load %arg2[%c4, %c0_42, %c0_43] : memref<8x8x384xf32, #tpu.memory_space<vmem>>, vector<1x8x384xf32>
    %147 = vector.shape_cast %146 : vector<1x8x384xf32> to vector<8x384xf32>
    %148 = arith.truncf %142 : vector<8x128xf32> to vector<8x128xbf16>
    %cst_44 = arith.constant dense<0.000000e+00> : vector<8x384xf32>
    %149 = tpu.matmul %148, %3, %cst_44 {dimension_numbers = #tpu.dot_dimension_numbers<[1], [0], [0], [1], [0, 0, 1, 1], [], []>} : vector<8x128xbf16>, vector<128x384xbf16>, vector<8x384xf32> -> vector<8x384xf32>
    %150 = vector.extract_strided_slice %147 {offsets = [0, 0], sizes = [8, 128], strides = [1, 1]} : vector<8x384xf32> to vector<8x128xf32>
    %151 = vector.extract_strided_slice %149 {offsets = [0, 0], sizes = [8, 128], strides = [1, 1]} : vector<8x384xf32> to vector<8x128xf32>
    %152 = arith.addf %150, %151 : vector<8x128xf32>
    %153 = arith.negf %152 : vector<8x128xf32>
    %154 = math.exp %153 : vector<8x128xf32>
    %cst_45 = arith.constant 1.000000e+00 : f32
    %155 = vector.broadcast %cst_45 : f32 to vector<8x128xf32>
    %156 = arith.addf %155, %154 : vector<8x128xf32>
    %157 = arith.divf %155, %156 : vector<8x128xf32>
    %158 = vector.extract_strided_slice %147 {offsets = [0, 128], sizes = [8, 128], strides = [1, 1]} : vector<8x384xf32> to vector<8x128xf32>
    %159 = vector.extract_strided_slice %149 {offsets = [0, 128], sizes = [8, 128], strides = [1, 1]} : vector<8x384xf32> to vector<8x128xf32>
    %160 = arith.addf %158, %159 : vector<8x128xf32>
    %161 = arith.negf %160 : vector<8x128xf32>
    %162 = math.exp %161 : vector<8x128xf32>
    %cst_46 = arith.constant 1.000000e+00 : f32
    %163 = vector.broadcast %cst_46 : f32 to vector<8x128xf32>
    %164 = arith.addf %163, %162 : vector<8x128xf32>
    %165 = arith.divf %163, %164 : vector<8x128xf32>
    %166 = vector.extract_strided_slice %147 {offsets = [0, 256], sizes = [8, 128], strides = [1, 1]} : vector<8x384xf32> to vector<8x128xf32>
    %167 = vector.extract_strided_slice %149 {offsets = [0, 256], sizes = [8, 128], strides = [1, 1]} : vector<8x384xf32> to vector<8x128xf32>
    %168 = vector.broadcast %4 : vector<1x128xf32> to vector<8x128xf32>
    %169 = arith.addf %167, %168 : vector<8x128xf32>
    %170 = arith.mulf %157, %169 : vector<8x128xf32>
    %171 = arith.addf %166, %170 : vector<8x128xf32>
    %172 = math.tanh %171 : vector<8x128xf32>
    %cst_47 = arith.constant 1.000000e+00 : f32
    %173 = vector.broadcast %cst_47 : f32 to vector<8x128xf32>
    %174 = arith.subf %173, %165 : vector<8x128xf32>
    %175 = arith.mulf %174, %172 : vector<8x128xf32>
    %176 = arith.mulf %165, %142 : vector<8x128xf32>
    %177 = arith.addf %175, %176 : vector<8x128xf32>
    %c0_48 = arith.constant 0 : index
    %c4_49 = arith.constant 4 : index
    %c0_50 = arith.constant 0 : index
    %178 = vector.load %arg5[%c0_48, %c4_49, %c0_50] : memref<8x8x128xf32, #tpu.memory_space<vmem>>, vector<8x1x128xf32>
    %179 = vector.shape_cast %178 : vector<8x1x128xf32> to vector<8x128xf32>
    %180 = vector.shape_cast %177 : vector<8x128xf32> to vector<8x1x128xf32>
    tpu.vector_store %arg5[%c0_48, %c4_49, %c0_50], %180 {strides = array<i32>} : memref<8x8x128xf32, #tpu.memory_space<vmem>>, vector<8x1x128xf32>,
    %c5 = arith.constant 5 : index
    %c0_51 = arith.constant 0 : index
    %c0_52 = arith.constant 0 : index
    %181 = vector.load %arg2[%c5, %c0_51, %c0_52] : memref<8x8x384xf32, #tpu.memory_space<vmem>>, vector<1x8x384xf32>
    %182 = vector.shape_cast %181 : vector<1x8x384xf32> to vector<8x384xf32>
    %183 = arith.truncf %177 : vector<8x128xf32> to vector<8x128xbf16>
    %cst_53 = arith.constant dense<0.000000e+00> : vector<8x384xf32>
    %184 = tpu.matmul %183, %3, %cst_53 {dimension_numbers = #tpu.dot_dimension_numbers<[1], [0], [0], [1], [0, 0, 1, 1], [], []>} : vector<8x128xbf16>, vector<128x384xbf16>, vector<8x384xf32> -> vector<8x384xf32>
    %185 = vector.extract_strided_slice %182 {offsets = [0, 0], sizes = [8, 128], strides = [1, 1]} : vector<8x384xf32> to vector<8x128xf32>
    %186 = vector.extract_strided_slice %184 {offsets = [0, 0], sizes = [8, 128], strides = [1, 1]} : vector<8x384xf32> to vector<8x128xf32>
    %187 = arith.addf %185, %186 : vector<8x128xf32>
    %188 = arith.negf %187 : vector<8x128xf32>
    %189 = math.exp %188 : vector<8x128xf32>
    %cst_54 = arith.constant 1.000000e+00 : f32
    %190 = vector.broadcast %cst_54 : f32 to vector<8x128xf32>
    %191 = arith.addf %190, %189 : vector<8x128xf32>
    %192 = arith.divf %190, %191 : vector<8x128xf32>
    %193 = vector.extract_strided_slice %182 {offsets = [0, 128], sizes = [8, 128], strides = [1, 1]} : vector<8x384xf32> to vector<8x128xf32>
    %194 = vector.extract_strided_slice %184 {offsets = [0, 128], sizes = [8, 128], strides = [1, 1]} : vector<8x384xf32> to vector<8x128xf32>
    %195 = arith.addf %193, %194 : vector<8x128xf32>
    %196 = arith.negf %195 : vector<8x128xf32>
    %197 = math.exp %196 : vector<8x128xf32>
    %cst_55 = arith.constant 1.000000e+00 : f32
    %198 = vector.broadcast %cst_55 : f32 to vector<8x128xf32>
    %199 = arith.addf %198, %197 : vector<8x128xf32>
    %200 = arith.divf %198, %199 : vector<8x128xf32>
    %201 = vector.extract_strided_slice %182 {offsets = [0, 256], sizes = [8, 128], strides = [1, 1]} : vector<8x384xf32> to vector<8x128xf32>
    %202 = vector.extract_strided_slice %184 {offsets = [0, 256], sizes = [8, 128], strides = [1, 1]} : vector<8x384xf32> to vector<8x128xf32>
    %203 = vector.broadcast %4 : vector<1x128xf32> to vector<8x128xf32>
    %204 = arith.addf %202, %203 : vector<8x128xf32>
    %205 = arith.mulf %192, %204 : vector<8x128xf32>
    %206 = arith.addf %201, %205 : vector<8x128xf32>
    %207 = math.tanh %206 : vector<8x128xf32>
    %cst_56 = arith.constant 1.000000e+00 : f32
    %208 = vector.broadcast %cst_56 : f32 to vector<8x128xf32>
    %209 = arith.subf %208, %200 : vector<8x128xf32>
    %210 = arith.mulf %209, %207 : vector<8x128xf32>
    %211 = arith.mulf %200, %177 : vector<8x128xf32>
    %212 = arith.addf %210, %211 : vector<8x128xf32>
    %c0_57 = arith.constant 0 : index
    %c5_58 = arith.constant 5 : index
    %c0_59 = arith.constant 0 : index
    %213 = vector.load %arg5[%c0_57, %c5_58, %c0_59] : memref<8x8x128xf32, #tpu.memory_space<vmem>>, vector<8x1x128xf32>
    %214 = vector.shape_cast %213 : vector<8x1x128xf32> to vector<8x128xf32>
    %215 = vector.shape_cast %212 : vector<8x128xf32> to vector<8x1x128xf32>
    tpu.vector_store %arg5[%c0_57, %c5_58, %c0_59], %215 {strides = array<i32>} : memref<8x8x128xf32, #tpu.memory_space<vmem>>, vector<8x1x128xf32>,
    %c6 = arith.constant 6 : index
    %c0_60 = arith.constant 0 : index
    %c0_61 = arith.constant 0 : index
    %216 = vector.load %arg2[%c6, %c0_60, %c0_61] : memref<8x8x384xf32, #tpu.memory_space<vmem>>, vector<1x8x384xf32>
    %217 = vector.shape_cast %216 : vector<1x8x384xf32> to vector<8x384xf32>
    %218 = arith.truncf %212 : vector<8x128xf32> to vector<8x128xbf16>
    %cst_62 = arith.constant dense<0.000000e+00> : vector<8x384xf32>
    %219 = tpu.matmul %218, %3, %cst_62 {dimension_numbers = #tpu.dot_dimension_numbers<[1], [0], [0], [1], [0, 0, 1, 1], [], []>} : vector<8x128xbf16>, vector<128x384xbf16>, vector<8x384xf32> -> vector<8x384xf32>
    %220 = vector.extract_strided_slice %217 {offsets = [0, 0], sizes = [8, 128], strides = [1, 1]} : vector<8x384xf32> to vector<8x128xf32>
    %221 = vector.extract_strided_slice %219 {offsets = [0, 0], sizes = [8, 128], strides = [1, 1]} : vector<8x384xf32> to vector<8x128xf32>
    %222 = arith.addf %220, %221 : vector<8x128xf32>
    %223 = arith.negf %222 : vector<8x128xf32>
    %224 = math.exp %223 : vector<8x128xf32>
    %cst_63 = arith.constant 1.000000e+00 : f32
    %225 = vector.broadcast %cst_63 : f32 to vector<8x128xf32>
    %226 = arith.addf %225, %224 : vector<8x128xf32>
    %227 = arith.divf %225, %226 : vector<8x128xf32>
    %228 = vector.extract_strided_slice %217 {offsets = [0, 128], sizes = [8, 128], strides = [1, 1]} : vector<8x384xf32> to vector<8x128xf32>
    %229 = vector.extract_strided_slice %219 {offsets = [0, 128], sizes = [8, 128], strides = [1, 1]} : vector<8x384xf32> to vector<8x128xf32>
    %230 = arith.addf %228, %229 : vector<8x128xf32>
    %231 = arith.negf %230 : vector<8x128xf32>
    %232 = math.exp %231 : vector<8x128xf32>
    %cst_64 = arith.constant 1.000000e+00 : f32
    %233 = vector.broadcast %cst_64 : f32 to vector<8x128xf32>
    %234 = arith.addf %233, %232 : vector<8x128xf32>
    %235 = arith.divf %233, %234 : vector<8x128xf32>
    %236 = vector.extract_strided_slice %217 {offsets = [0, 256], sizes = [8, 128], strides = [1, 1]} : vector<8x384xf32> to vector<8x128xf32>
    %237 = vector.extract_strided_slice %219 {offsets = [0, 256], sizes = [8, 128], strides = [1, 1]} : vector<8x384xf32> to vector<8x128xf32>
    %238 = vector.broadcast %4 : vector<1x128xf32> to vector<8x128xf32>
    %239 = arith.addf %237, %238 : vector<8x128xf32>
    %240 = arith.mulf %227, %239 : vector<8x128xf32>
    %241 = arith.addf %236, %240 : vector<8x128xf32>
    %242 = math.tanh %241 : vector<8x128xf32>
    %cst_65 = arith.constant 1.000000e+00 : f32
    %243 = vector.broadcast %cst_65 : f32 to vector<8x128xf32>
    %244 = arith.subf %243, %235 : vector<8x128xf32>
    %245 = arith.mulf %244, %242 : vector<8x128xf32>
    %246 = arith.mulf %235, %212 : vector<8x128xf32>
    %247 = arith.addf %245, %246 : vector<8x128xf32>
    %c0_66 = arith.constant 0 : index
    %c6_67 = arith.constant 6 : index
    %c0_68 = arith.constant 0 : index
    %248 = vector.load %arg5[%c0_66, %c6_67, %c0_68] : memref<8x8x128xf32, #tpu.memory_space<vmem>>, vector<8x1x128xf32>
    %249 = vector.shape_cast %248 : vector<8x1x128xf32> to vector<8x128xf32>
    %250 = vector.shape_cast %247 : vector<8x128xf32> to vector<8x1x128xf32>
    tpu.vector_store %arg5[%c0_66, %c6_67, %c0_68], %250 {strides = array<i32>} : memref<8x8x128xf32, #tpu.memory_space<vmem>>, vector<8x1x128xf32>,
    %c7 = arith.constant 7 : index
    %c0_69 = arith.constant 0 : index
    %c0_70 = arith.constant 0 : index
    %251 = vector.load %arg2[%c7, %c0_69, %c0_70] : memref<8x8x384xf32, #tpu.memory_space<vmem>>, vector<1x8x384xf32>
    %252 = vector.shape_cast %251 : vector<1x8x384xf32> to vector<8x384xf32>
    %253 = arith.truncf %247 : vector<8x128xf32> to vector<8x128xbf16>
    %cst_71 = arith.constant dense<0.000000e+00> : vector<8x384xf32>
    %254 = tpu.matmul %253, %3, %cst_71 {dimension_numbers = #tpu.dot_dimension_numbers<[1], [0], [0], [1], [0, 0, 1, 1], [], []>} : vector<8x128xbf16>, vector<128x384xbf16>, vector<8x384xf32> -> vector<8x384xf32>
    %255 = vector.extract_strided_slice %252 {offsets = [0, 0], sizes = [8, 128], strides = [1, 1]} : vector<8x384xf32> to vector<8x128xf32>
    %256 = vector.extract_strided_slice %254 {offsets = [0, 0], sizes = [8, 128], strides = [1, 1]} : vector<8x384xf32> to vector<8x128xf32>
    %257 = arith.addf %255, %256 : vector<8x128xf32>
    %258 = arith.negf %257 : vector<8x128xf32>
    %259 = math.exp %258 : vector<8x128xf32>
    %cst_72 = arith.constant 1.000000e+00 : f32
    %260 = vector.broadcast %cst_72 : f32 to vector<8x128xf32>
    %261 = arith.addf %260, %259 : vector<8x128xf32>
    %262 = arith.divf %260, %261 : vector<8x128xf32>
    %263 = vector.extract_strided_slice %252 {offsets = [0, 128], sizes = [8, 128], strides = [1, 1]} : vector<8x384xf32> to vector<8x128xf32>
    %264 = vector.extract_strided_slice %254 {offsets = [0, 128], sizes = [8, 128], strides = [1, 1]} : vector<8x384xf32> to vector<8x128xf32>
    %265 = arith.addf %263, %264 : vector<8x128xf32>
    %266 = arith.negf %265 : vector<8x128xf32>
    %267 = math.exp %266 : vector<8x128xf32>
    %cst_73 = arith.constant 1.000000e+00 : f32
    %268 = vector.broadcast %cst_73 : f32 to vector<8x128xf32>
    %269 = arith.addf %268, %267 : vector<8x128xf32>
    %270 = arith.divf %268, %269 : vector<8x128xf32>
    %271 = vector.extract_strided_slice %252 {offsets = [0, 256], sizes = [8, 128], strides = [1, 1]} : vector<8x384xf32> to vector<8x128xf32>
    %272 = vector.extract_strided_slice %254 {offsets = [0, 256], sizes = [8, 128], strides = [1, 1]} : vector<8x384xf32> to vector<8x128xf32>
    %273 = vector.broadcast %4 : vector<1x128xf32> to vector<8x128xf32>
    %274 = arith.addf %272, %273 : vector<8x128xf32>
    %275 = arith.mulf %262, %274 : vector<8x128xf32>
    %276 = arith.addf %271, %275 : vector<8x128xf32>
    %277 = math.tanh %276 : vector<8x128xf32>
    %cst_74 = arith.constant 1.000000e+00 : f32
    %278 = vector.broadcast %cst_74 : f32 to vector<8x128xf32>
    %279 = arith.subf %278, %270 : vector<8x128xf32>
    %280 = arith.mulf %279, %277 : vector<8x128xf32>
    %281 = arith.mulf %270, %247 : vector<8x128xf32>
    %282 = arith.addf %280, %281 : vector<8x128xf32>
    %c0_75 = arith.constant 0 : index
    %c7_76 = arith.constant 7 : index
    %c0_77 = arith.constant 0 : index
    %283 = vector.load %arg5[%c0_75, %c7_76, %c0_77] : memref<8x8x128xf32, #tpu.memory_space<vmem>>, vector<8x1x128xf32>
    %284 = vector.shape_cast %283 : vector<8x1x128xf32> to vector<8x128xf32>
    %285 = vector.shape_cast %282 : vector<8x128xf32> to vector<8x1x128xf32>
    tpu.vector_store %arg5[%c0_75, %c7_76, %c0_77], %285 {strides = array<i32>} : memref<8x8x128xf32, #tpu.memory_space<vmem>>, vector<8x1x128xf32>,
    %c0_78 = arith.constant 0 : index
    %c0_79 = arith.constant 0 : index
    %286 = vector.load %arg6[%c0_78, %c0_79] : memref<8x128xf32, #tpu.memory_space<vmem>>, vector<8x128xf32>
    tpu.vector_store %arg6[%c0_78, %c0_79], %282 {strides = array<i32>} : memref<8x128xf32, #tpu.memory_space<vmem>>, vector<8x128xf32>,
    return
  }
  func.func @transform_0(%arg0: i32, %arg1: i32) -> (i32, i32, i32) {
    %c0_i32 = arith.constant 0 : i32
    %c0_i32_0 = arith.constant 0 : i32
    return %arg1, %arg0, %c0_i32 : i32, i32, i32
  }
  func.func @transform_1(%arg0: i32, %arg1: i32) -> (i32, i32) {
    %c0_i32 = arith.constant 0 : i32
    %c0_i32_0 = arith.constant 0 : i32
    %c0_i32_1 = arith.constant 0 : i32
    return %c0_i32, %c0_i32_0 : i32, i32
  }
  func.func @transform_2(%arg0: i32, %arg1: i32) -> (i32, i32) {
    %c0_i32 = arith.constant 0 : i32
    %c0_i32_0 = arith.constant 0 : i32
    %c0_i32_1 = arith.constant 0 : i32
    return %c0_i32, %c0_i32_0 : i32, i32
  }
  func.func @transform_3(%arg0: i32, %arg1: i32) -> (i32, i32, i32) {
    %c0_i32 = arith.constant 0 : i32
    %c0_i32_0 = arith.constant 0 : i32
    return %arg0, %arg1, %c0_i32 : i32, i32, i32
  }
}

</mosaic_0001>

<bundles_post_ra>
// kernel: tpu_custom_call.1
= control target key start
LH: loop header
LB: loop body
LE: loop exit
PB: predicated region body
PF: predicated region fallthrough
CT: control target
= control target key end

     0   :  { %8 = vsyncpa [#allocation4], 0  ;;  %s2662_s0 = inlined_call_operand.hbm [shape: f32[8,8,384], index: 0, kind: input, shape index: {}]   ;;  %s2663_s1 = inlined_call_operand.hbm [shape: bf16[128,384], index: 1, kind: input, shape index: {}]   ;;  %s2664_s2 = inlined_call_operand.vmem [shape: f32[1,128], index: 2, kind: input, shape index: {}]   ;;  %s2665_s3 = inlined_call_operand.hbm [shape: f32[8,8,128], index: 3, kind: output, shape index: {}]  }
   0x1   :  { %9 = vsyncpa [#allocation7], 0 }
   0x2   :  { %10 = vsyncpa [#allocation5], 0  ;;  %s2149_s12 = smov [#allocation3]  }
   0x3   :  { %s16_s13 = sshll.u32 %s2149_s12, 4  ;;  %s17_s13 = int_to_ptr.vmem [resolvable:$true] %s16_s13 }
   0x4   :  { %s2091_s14 = scalar_lea.vmem %s17_s13, 3072  ;;  %p2096_p1 = scmp.lt.s32.totalorder %s17_s13, %s17_s13 }
   0x5   :  { %p2092_p0 = scmp.ne.s32.totalorder %s17_s13, %s2091_s14  ;;  %p2097_p2 = scmp.lt.s32.totalorder %s2091_s14, %s2091_s14 }
   0x7   :  { %p2098_p3 = por %p2097_p2, %p2096_p1 }
   0x9   :  { %p2099_p4 = pnand %p2098_p3, %p2092_p0 }
   0xb   :  { %2102 = shalt.err (!%p2099_p4)
}
   0xc   :  { %s2150_s15 = smov 384   ;;  %s2151_s16 = smov 24  }
   0xd   :  { %22 = dma.hbm_to_vmem [thread:$0]  %s2662_s0, 3072, %s17_s13, [#allocation4], %s2150_s15, %s2150_s15, %s2151_s16  }
   0xe   :  { %s2152_s19 = smov [#allocation6]  }
   0xf   :  { %s28_s20 = sshll.u32 %s2152_s19, 4  ;;  %s29_s20 = int_to_ptr.vmem [resolvable:$true] %s28_s20 }
  0x10   :  { %s2111_s21 = scalar_lea.vmem %s29_s20, 3072  ;;  %p2116_p6 = scmp.lt.s32.totalorder %s29_s20, %s29_s20 }
  0x11   :  { %p2112_p5 = scmp.ne.s32.totalorder %s29_s20, %s2111_s21  ;;  %p2117_p7 = scmp.lt.s32.totalorder %s2111_s21, %s2111_s21 }
  0x13   :  { %p2118_p8 = por %p2117_p7, %p2116_p6 }
  0x15   :  { %p2119_p9 = pnand %p2118_p8, %p2112_p5 }
  0x17   :  { %2122 = shalt.err (!%p2119_p9)
}
  0x18   :  { %s2153_s22 = smov 192   ;;  %s2154_s23 = smov 12  }
  0x19   :  { %34 = dma.hbm_to_vmem [thread:$0]  %s2663_s1, 3072, %s29_s20, [#allocation7], %s2153_s22, %s2153_s22, %s2154_s23  }
  0x1a   :  { %2143 = dma.done.wait [#allocation4], 3072  }
  0x1b   :  { %2144 = vsyncadd [#allocation4], 4294964224 }
  0x1c   :  { %2145 = dma.done.wait [#allocation7], 3072  }
  0x1d   :  { %2146 = vsyncadd [#allocation7], 4294964224  ;;  %v2155_v0 = vmov 0.0   ;;  %v2156_v1 = vmov 0   ;;  %vm2157_vm0 = vmmov 0   ;;  %v2158_v25 = vmov 0.0|0.0  }
  0x1e   :  { %1772 = vmatprep.subr.bf16.mxu1 %v2155_v0  ;;  %247 = vmatprep.mubr.bf16.mxu0 %v2156_v1  ;;  %v2193_v2 = vld [vmem:[#allocation6 + $0xac] ss:$12 sps:$4 sm:$0xff]   ;;  %v2195_v3 = vld [vmem:[#allocation6 + $0xa8] ss:$12 sps:$4 sm:$0xff]   ;;  %v2201_v5 = vld [vmem:[#allocation6 + $0x90] ss:$12 sps:$4 sm:$0xff]   ;;  %v329_v53 = vlaneseq }
  0x1f   :  { %1788 = vmatprep.mubr.msk.bf16.mxu1 %vm2157_vm0, %v2155_v0  ;;  %215 = vmatprep.subr.bf16.mxu0 %v2193_v2  ;;  %v2198_v4 = vld [vmem:[#allocation6 + $0x94] ss:$12 sps:$4 sm:$0xff]   ;;  %v2204_v6 = vld [vmem:[#allocation6 + $0x7c] ss:$12 sps:$4 sm:$0xff]   ;;  %v2207_v7 = vld [vmem:[#allocation6 + $0x78] ss:$12 sps:$4 sm:$0xff]  }
  0x20   :  { %216 = vmatpush1.bf16.msra.mxu0 %v2195_v3  ;;  %v2210_v8 = vld [vmem:[#allocation6 + $0x64] ss:$12 sps:$4 sm:$0xff]   ;;  %v2215_v10 = vld [vmem:[#allocation6 + $0x60] ss:$12 sps:$4 sm:$0xff]   ;;  %v2224_v13 = vld [vmem:[#allocation6 + $0x48] ss:$12 sps:$4 sm:$0xff]  }
  0x21   :  { %217 = vmatprep.subr.bf16.mxu0 %v2198_v4  ;;  %v2212_v9 = vld [vmem:[#allocation6 + $0xb0] ss:$12 sps:$4 sm:$0xff]   ;;  %v2217_v11 = vld [vmem:[#allocation6 + $0x4c] ss:$12 sps:$4 sm:$0xff]   ;;  %v2227_v14 = vld [vmem:[#allocation6 + $0x34] ss:$12 sps:$4 sm:$0xff]  }
  0x22   :  { %1773 = vmatpush3.bf16.msra.mxu1 %v2212_v9  ;;  %v2221_v12 = vld [vmem:[#allocation6 + $0x98] ss:$12 sps:$4 sm:$0xff]   ;;  %v2231_v15 = vld [vmem:[#allocation6 + $0x80] ss:$12 sps:$4 sm:$0xff]   ;;  %v2235_v16 = vld [vmem:[#allocation6 + $0x30] ss:$12 sps:$4 sm:$0xff]  }
  0x23   :  { %1774 = vmatprep.subr.bf16.mxu1 %v2155_v0  ;;  %v2238_v17 = vld [vmem:[#allocation6 + $0x1c] ss:$12 sps:$4 sm:$0xff]   ;;  %v2245_v19 = vld [vmem:[#allocation6 + $0x18] ss:$12 sps:$4 sm:$0xff]   ;;  %v2255_v22 = vld [vmem:[#allocation6] ss:$12 sps:$4 sm:$0xff]  }
  0x24   :  { %218 = vmatpush1.bf16.msra.mxu0 %v2201_v5  ;;  %v2241_v18 = vld [vmem:[#allocation6 + $0x68] ss:$12 sps:$4 sm:$0xff]   ;;  %v2248_v20 = vld [vmem:[#allocation6 + $0x4] ss:$12 sps:$4 sm:$0xff]   ;;  %v2264_v24 = vld [vmem:[#allocation6 + $0x20] ss:$12 sps:$4 sm:$0xff]  }
  0x25   :  { %219 = vmatprep.subr.bf16.mxu0 %v2204_v6  ;;  %v2251_v21 = vld [vmem:[#allocation6 + $0x50] ss:$12 sps:$4 sm:$0xff]   ;;  %v2259_v23 = vld [vmem:[#allocation6 + $0x38] ss:$12 sps:$4 sm:$0xff]   ;;  %v2271_v26 = vld [vmem:[#allocation6 + $0x8] ss:$12 sps:$4 sm:$0xff]  }
  0x26   :  { %1775 = vmatpush3.bf16.msra.mxu1 %v2221_v12  ;;  %v83_v27 = vld [vmem:[#allocation3] sm:$0xff]  ;;  %v84_v32 = vld [vmem:[#allocation3 + $0x8] sm:$0xff]  ;;  %v85_v48 = vld [vmem:[#allocation3 + $0x10] sm:$0xff]  ;;  %v2159_v51 = vmov 1966171168   ;;  %v330_v56 = vshrl.u32 %v329_v53, 7 }
  0x27   :  { %1776 = vmatprep.subr.bf16.mxu1 %v2155_v0  ;;  %v2312_v44 = vld [vmem:[%s2664_s2] ss:$0 sm:$0xff]  ;;  %v327_v52 = vunpack.c.l.s4 %v2159_v51 }
  0x28   :  { %220 = vmatpush1.bf16.msra.mxu0 %v2207_v7 }
  0x29   :  { %221 = vmatprep.subr.bf16.mxu0 %v2210_v8  ;;  %v328_v55 = vunpack.c.0.s8 %v327_v52 }
  0x2a   :  { %1777 = vmatpush3.bf16.msra.mxu1 %v2231_v15 }
  0x2b   :  { %1778 = vmatprep.subr.bf16.mxu1 %v2155_v0  ;;  %v2315_v61 = vsub.s32 %v328_v55, %v330_v56 }
  0x2c   :  { %222 = vmatpush1.bf16.msra.mxu0 %v2215_v10 }
  0x2d   :  { %223 = vmatprep.subr.bf16.mxu0 %v2217_v11 }
  0x2e   :  { %1779 = vmatpush3.bf16.msra.mxu1 %v2241_v18 }
  0x2f   :  { %1780 = vmatprep.subr.bf16.mxu1 %v2155_v0 }
  0x30   :  { %224 = vmatpush1.bf16.msra.mxu0 %v2224_v13 }
  0x31   :  { %225 = vmatprep.subr.bf16.mxu0 %v2227_v14 }
  0x32   :  { %1781 = vmatpush3.bf16.msra.mxu1 %v2251_v21 }
  0x33   :  { %1782 = vmatprep.subr.bf16.mxu1 %v2155_v0 }
  0x34   :  { %226 = vmatpush1.bf16.msra.mxu0 %v2235_v16 }
  0x35   :  { %227 = vmatprep.subr.bf16.mxu0 %v2238_v17 }
  0x36   :  { %1783 = vmatpush3.bf16.msra.mxu1 %v2259_v23 }
  0x37   :  { %1784 = vmatprep.subr.bf16.mxu1 %v2155_v0 }
  0x38   :  { %228 = vmatpush1.bf16.msra.mxu0 %v2245_v19 }
  0x39   :  { %229 = vmatprep.subr.bf16.mxu0 %v2248_v20 }
  0x3a   :  { %1785 = vmatpush3.bf16.msra.mxu1 %v2264_v24 }
  0x3b   :  { %1786 = vmatprep.subr.bf16.mxu1 %v2155_v0 }
  0x3c   :  { %230 = vmatpush1.bf16.msra.mxu0 %v2255_v22 }
  0x3d   :  { %395 = vmatprep.subr.bf16.mxu0 %v2193_v2 }
  0x3e   :  { %1787 = vmatpush3.bf16.msra.mxu1 %v2271_v26 }
  0x3f   :  { %248 = vmatmul.mubr.bf16.vlgmr.msra.gmra.mxu0 %v2158_v25  ;;  %1792 = vmatprep.subr.bf16.mxu1 %v2155_v0 }
  0x40   :  { %396 = vmatpush1.bf16.msra.mxu0 %v2195_v3  ;;  %427 = vmatprep.mubr.bf16.mxu0 %v2156_v1 }
  0x41   :  { %397 = vmatprep.subr.bf16.mxu0 %v2198_v4  ;;  %1789 = vmatmul.mubr.bf16.vlgmr.msra.gmra.mxu1 %v2158_v25 }
  0x42   :  { %1793 = vmatpush3.bf16.msra.mxu1 %v2212_v9  ;;  %1808 = vmatprep.mubr.msk.bf16.mxu1 %vm2157_vm0, %v2155_v0 }
  0x43   :  { %1794 = vmatprep.subr.bf16.mxu1 %v2155_v0 }
  0x44   :  { %398 = vmatpush1.bf16.msra.mxu0 %v2201_v5 }
  0x45   :  { %399 = vmatprep.subr.bf16.mxu0 %v2204_v6 }
  0x46   :  { %1795 = vmatpush3.bf16.msra.mxu1 %v2221_v12 }
  0x47   :  { %1796 = vmatprep.subr.bf16.mxu1 %v2155_v0 }
  0x48   :  { %400 = vmatpush1.bf16.msra.mxu0 %v2207_v7 }
  0x49   :  { %401 = vmatprep.subr.bf16.mxu0 %v2210_v8 }
  0x4a   :  { %1797 = vmatpush3.bf16.msra.mxu1 %v2231_v15 }
  0x4b   :  { %1798 = vmatprep.subr.bf16.mxu1 %v2155_v0 }
  0x4c   :  { %402 = vmatpush1.bf16.msra.mxu0 %v2215_v10 }
  0x4d   :  { %403 = vmatprep.subr.bf16.mxu0 %v2217_v11 }
  0x4e   :  { %1799 = vmatpush3.bf16.msra.mxu1 %v2241_v18 }
  0x4f   :  { %1800 = vmatprep.subr.bf16.mxu1 %v2155_v0 }
  0x50   :  { %404 = vmatpush1.bf16.msra.mxu0 %v2224_v13 }
  0x51   :  { %405 = vmatprep.subr.bf16.mxu0 %v2227_v14 }
  0x52   :  { %1801 = vmatpush3.bf16.msra.mxu1 %v2251_v21 }
  0x53   :  { %1802 = vmatprep.subr.bf16.mxu1 %v2155_v0 }
  0x54   :  { %406 = vmatpush1.bf16.msra.mxu0 %v2235_v16 }
  0x55   :  { %407 = vmatprep.subr.bf16.mxu0 %v2238_v17 }
  0x56   :  { %1803 = vmatpush3.bf16.msra.mxu1 %v2259_v23 }
  0x57   :  { %1804 = vmatprep.subr.bf16.mxu1 %v2155_v0 }
  0x58   :  { %408 = vmatpush1.bf16.msra.mxu0 %v2245_v19 }
  0x59   :  { %409 = vmatprep.subr.bf16.mxu0 %v2248_v20 }
  0x5a   :  { %1805 = vmatpush3.bf16.msra.mxu1 %v2264_v24 }
  0x5b   :  { %1806 = vmatprep.subr.bf16.mxu1 %v2155_v0 }
  0x5c   :  { %410 = vmatpush1.bf16.msra.mxu0 %v2255_v22 }
  0x5d   :  { %569 = vmatprep.subr.bf16.mxu0 %v2193_v2 }
  0x5e   :  { %1807 = vmatpush3.bf16.msra.mxu1 %v2271_v26 }
  0x5f   :  { %1812 = vmatprep.subr.bf16.mxu1 %v2155_v0 }
  0xff   :  { %v249_v28 = vpop.f32.mrf.mxu0 }
 0x100   :  { %v296_v29 = vadd.f32 %v249_v28, %v83_v27 }
 0x101   :  { %v251_v30 = vpop.f32.mrf.mxu0  ;;  %v290_v36 = vpop.f32.mrf.mxu1 }
 0x102   :  { %v1651_v31 = vmul.f32 -1.442695, %v296_v29  ;;  %v303_v35 = vadd.f32 %v251_v30, %v84_v32  ;;  %v316_v46 = vadd.f32 %v2312_v44, %v290_v36 }
 0x103   :  { %v253_v33 = vpop.f32.mrf.mxu0  ;;  %v1790_v38 = vpop.f32.mrf.mxu1 }
 0x104   :  { %1978 = vpow2.f32 %v1651_v31  ;;  %v1652_v37 = vmul.f32 -1.442695, %v303_v35 }
 0x105   :  { %v254_v34 = vpop.f32.mrf.mxu0  ;;  %v293_v39 = vpop.f32.mrf.mxu1 }
 0x106   :  { %1980 = vpow2.f32 %v1652_v37  ;;  %v391_v39 = vld [vmem:[#allocation3 + $0x18] sm:$0xff] }
 0x107   :  { %v1791_v40 = vpop.f32.mrf.mxu1 }
 0x111   :  { %v1979_v41 = vpop.eup %1978 }
 0x112   :  { %v300_v42 = vadd.f32 1.0, %v1979_v41 }
 0x113   :  { %v1981_v43 = vpop.eup %1980 }
 0x114   :  { %1982 = vrcp.f32 %v300_v42  ;;  %v307_v45 = vadd.f32 1.0, %v1981_v43 }
 0x116   :  { %1984 = vrcp.f32 %v307_v45 }
 0x121   :  { %v1983_v47 = vpop.eup %1982 }
 0x122   :  { %v317_v49 = vmul.f32 %v1983_v47, %v316_v46  ;;  %v392_v47 = vld [vmem:[#allocation3 + $0x20] sm:$0xff] }
 0x123   :  { %v1985_v54 = vpop.eup %1984 }
 0x124   :  { %v318_v50 = vadd.f32 %v317_v49, %v85_v48  ;;  %v320_v57 = vsub.f32 1.0, %v1985_v54  ;;  %v322_v60 = vmul.f32 0.0, %v1985_v54 }
 0x126   :  { %1986 = vtanh.f32 %v318_v50 }
 0x133   :  { %v1987_v58 = vpop.eup %1986 }
 0x134   :  { %v321_v59 = vmul.f32 %v1987_v58, %v320_v57 }
 0x136   :  { %v2317_v62 = vadd.f32 %v322_v60, %v321_v59  ;;  %v393_v60 = vld [vmem:[#allocation3 + $0x28] sm:$0xff] }
 0x138   :  { %v325_v63 = vcombine.high %v2317_v62, %v2317_v62  ;;  %v332_v25 = vrot.slane %v2317_v62, %v2315_v61  ;;  %v394_v27 = vpack.c.bf16 %v2317_v62, %v2317_v62 }
 0x13a   :  { %v339_v28 = vrot.slane %v325_v63, %v2315_v61  ;;  %v340_v29 = vcombine.high %v332_v25, %v332_v25  ;;  %v348_v30 = vrot.slane %v332_v25, %v2315_v61  ;;  %1654 = vst.sshfl [vmem:[#allocation8] sm:$0x1 pattern:$0x73625140] %v332_v25  ;;  %428 = vmatmul.mubr.bf16.vlgmr.msra.gmra.mxu0 %v394_v27 }
 0x13b   :  { %1809 = vmatmul.mubr.bf16.vlgmr.msra.gmra.mxu1 %v394_v27  ;;  %570 = vmatpush1.bf16.msra.mxu0 %v2195_v3 }
 0x13c   :  { %1813 = vmatpush3.bf16.msra.mxu1 %v2212_v9  ;;  %v341_v31 = vcombine.high %v339_v28, %v339_v28  ;;  %v355_v32 = vrot.slane %v339_v28, %v2315_v61  ;;  %v362_v33 = vrot.slane %v340_v29, %v2315_v61  ;;  %v370_v34 = vcombine.high %v348_v30, %v348_v30 }
 0x13d   :  { %1655 = vst.sshfl [vmem:[#allocation8 + $0x8] sm:$0x1 pattern:$0x73625140] %v340_v29  ;;  %571 = vmatprep.subr.bf16.mxu0 %v2198_v4  ;;  %1814 = vmatprep.subr.bf16.mxu1 %v2155_v0 }
 0x13e   :  { %1656 = vst.sshfl [vmem:[#allocation8 + $0x20] sm:$0x1 pattern:$0x73625140] %v339_v28  ;;  %601 = vmatprep.mubr.bf16.mxu0 %v2156_v1  ;;  %v369_v35 = vrot.slane %v341_v31, %v2315_v61  ;;  %v371_v36 = vcombine.high %v355_v32, %v355_v32  ;;  %v372_v37 = vcombine.high %v362_v33, %v362_v33  ;;  %384 = vst [vmem:[#allocation8 + $0x10] sm:$0x1] %v370_v34 }
 0x13f   :  { %1657 = vst.sshfl [vmem:[#allocation8 + $0x28] sm:$0x1 pattern:$0x73625140] %v341_v31  ;;  %1828 = vmatprep.mubr.msk.bf16.mxu1 %vm2157_vm0, %v2155_v0  ;;  %572 = vmatpush1.bf16.msra.mxu0 %v2201_v5 }
 0x140   :  { %1815 = vmatpush3.bf16.msra.mxu1 %v2221_v12  ;;  %v373_v38 = vcombine.high %v369_v35, %v369_v35  ;;  %385 = vst [vmem:[#allocation8 + $0x18] sm:$0x1] %v372_v37  ;;  %388 = vst [vmem:[#allocation8 + $0x30] sm:$0x1] %v371_v36  ;;  %573 = vmatprep.subr.bf16.mxu0 %v2204_v6 }
 0x141   :  { %1816 = vmatprep.subr.bf16.mxu1 %v2155_v0 }
 0x142   :  { %389 = vst [vmem:[#allocation8 + $0x38] sm:$0x1] %v373_v38 }
 0x143   :  { %574 = vmatpush1.bf16.msra.mxu0 %v2207_v7 }
 0x144   :  { %1817 = vmatpush3.bf16.msra.mxu1 %v2231_v15  ;;  %575 = vmatprep.subr.bf16.mxu0 %v2210_v8 }
 0x145   :  { %1818 = vmatprep.subr.bf16.mxu1 %v2155_v0 }
 0x147   :  { %576 = vmatpush1.bf16.msra.mxu0 %v2215_v10 }
 0x148   :  { %1819 = vmatpush3.bf16.msra.mxu1 %v2241_v18  ;;  %577 = vmatprep.subr.bf16.mxu0 %v2217_v11 }
 0x149   :  { %1820 = vmatprep.subr.bf16.mxu1 %v2155_v0 }
 0x14b   :  { %578 = vmatpush1.bf16.msra.mxu0 %v2224_v13 }
 0x14c   :  { %1821 = vmatpush3.bf16.msra.mxu1 %v2251_v21  ;;  %579 = vmatprep.subr.bf16.mxu0 %v2227_v14 }
 0x14d   :  { %1822 = vmatprep.subr.bf16.mxu1 %v2155_v0 }
 0x14f   :  { %580 = vmatpush1.bf16.msra.mxu0 %v2235_v16 }
 0x150   :  { %1823 = vmatpush3.bf16.msra.mxu1 %v2259_v23  ;;  %581 = vmatprep.subr.bf16.mxu0 %v2238_v17 }
 0x151   :  { %1824 = vmatprep.subr.bf16.mxu1 %v2155_v0 }
 0x153   :  { %582 = vmatpush1.bf16.msra.mxu0 %v2245_v19 }
 0x154   :  { %1825 = vmatpush3.bf16.msra.mxu1 %v2264_v24  ;;  %583 = vmatprep.subr.bf16.mxu0 %v2248_v20 }
 0x155   :  { %1826 = vmatprep.subr.bf16.mxu1 %v2155_v0 }
 0x157   :  { %584 = vmatpush1.bf16.msra.mxu0 %v2255_v22 }
 0x158   :  { %1827 = vmatpush3.bf16.msra.mxu1 %v2271_v26  ;;  %743 = vmatprep.subr.bf16.mxu0 %v2193_v2 }
 0x159   :  { %1832 = vmatprep.subr.bf16.mxu1 %v2155_v0 }
 0x1fa   :  { %v429_v40 = vpop.f32.mrf.mxu0 }
 0x1fb   :  { %v470_v41 = vpop.f32.mrf.mxu1  ;;  %v476_v42 = vadd.f32 %v429_v40, %v391_v39 }
 0x1fc   :  { %v431_v43 = vpop.f32.mrf.mxu0  ;;  %v490_v58 = vadd.f32 %v2312_v44, %v470_v41 }
 0x1fd   :  { %v1810_v45 = vpop.f32.mrf.mxu1  ;;  %v1658_v46 = vmul.f32 -1.442695, %v476_v42  ;;  %v483_v52 = vadd.f32 %v431_v43, %v392_v47  ;;  %v565_v47 = vld [vmem:[#allocation3 + $0x30] sm:$0xff] }
 0x1fe   :  { %v433_v48 = vpop.f32.mrf.mxu0 }
 0x1ff   :  { %v473_v49 = vpop.f32.mrf.mxu1  ;;  %1988 = vpow2.f32 %v1658_v46  ;;  %v1659_v53 = vmul.f32 -1.442695, %v483_v52 }
 0x200   :  { %v434_v50 = vpop.f32.mrf.mxu0 }
 0x201   :  { %v1811_v51 = vpop.f32.mrf.mxu1  ;;  %1990 = vpow2.f32 %v1659_v53 }
 0x20c   :  { %v1989_v54 = vpop.eup %1988 }
 0x20d   :  { %v480_v55 = vadd.f32 1.0, %v1989_v54  ;;  %v566_v54 = vld [vmem:[#allocation3 + $0x38] sm:$0xff] }
 0x20e   :  { %v1991_v56 = vpop.eup %1990 }
 0x20f   :  { %1992 = vrcp.f32 %v480_v55  ;;  %v487_v57 = vadd.f32 1.0, %v1991_v56 }
 0x211   :  { %1994 = vrcp.f32 %v487_v57 }
 0x21c   :  { %v1993_v59 = vpop.eup %1992 }
 0x21d   :  { %v491_v63 = vmul.f32 %v1993_v59, %v490_v58 }
 0x21e   :  { %v1995_v27 = vpop.eup %1994 }
 0x21f   :  { %v492_v25 = vadd.f32 %v491_v63, %v393_v60  ;;  %v494_v28 = vsub.f32 1.0, %v1995_v27  ;;  %v496_v31 = vmul.f32 %v1995_v27, %v2317_v62 }
 0x221   :  { %1996 = vtanh.f32 %v492_v25 }
 0x22e   :  { %v1997_v29 = vpop.eup %1996 }
 0x22f   :  { %v495_v30 = vmul.f32 %v1997_v29, %v494_v28 }
 0x231   :  { %v2367_v32 = vadd.f32 %v496_v31, %v495_v30  ;;  %v567_v31 = vld [vmem:[#allocation3 + $0x40] sm:$0xff] }
 0x233   :  { %v499_v33 = vcombine.high %v2367_v32, %v2367_v32  ;;  %v506_v34 = vrot.slane %v2367_v32, %v2315_v61  ;;  %v568_v35 = vpack.c.bf16 %v2367_v32, %v2367_v32 }
 0x235   :  { %v513_v36 = vrot.slane %v499_v33, %v2315_v61  ;;  %v514_v37 = vcombine.high %v506_v34, %v506_v34  ;;  %v522_v38 = vrot.slane %v506_v34, %v2315_v61  ;;  %1660 = vst.sshfl [vmem:[#allocation8 + $0x1] sm:$0x1 pattern:$0x73625140] %v506_v34  ;;  %602 = vmatmul.mubr.bf16.vlgmr.msra.gmra.mxu0 %v568_v35 }
 0x236   :  { %1829 = vmatmul.mubr.bf16.vlgmr.msra.gmra.mxu1 %v568_v35  ;;  %744 = vmatpush1.bf16.msra.mxu0 %v2195_v3 }
 0x237   :  { %1833 = vmatpush3.bf16.msra.mxu1 %v2212_v9  ;;  %v515_v62 = vcombine.high %v513_v36, %v513_v36  ;;  %v529_v39 = vrot.slane %v513_v36, %v2315_v61  ;;  %v536_v40 = vrot.slane %v514_v37, %v2315_v61  ;;  %v544_v41 = vcombine.high %v522_v38, %v522_v38 }
 0x238   :  { %1661 = vst.sshfl [vmem:[#allocation8 + $0x9] sm:$0x1 pattern:$0x73625140] %v514_v37  ;;  %745 = vmatprep.subr.bf16.mxu0 %v2198_v4  ;;  %1834 = vmatprep.subr.bf16.mxu1 %v2155_v0 }
 0x239   :  { %1662 = vst.sshfl [vmem:[#allocation8 + $0x21] sm:$0x1 pattern:$0x73625140] %v513_v36  ;;  %775 = vmatprep.mubr.bf16.mxu0 %v2156_v1  ;;  %v543_v42 = vrot.slane %v515_v62, %v2315_v61  ;;  %v545_v43 = vcombine.high %v529_v39, %v529_v39  ;;  %v546_v45 = vcombine.high %v536_v40, %v536_v40  ;;  %558 = vst [vmem:[#allocation8 + $0x11] sm:$0x1] %v544_v41 }
 0x23a   :  { %1663 = vst.sshfl [vmem:[#allocation8 + $0x29] sm:$0x1 pattern:$0x73625140] %v515_v62  ;;  %1848 = vmatprep.mubr.msk.bf16.mxu1 %vm2157_vm0, %v2155_v0  ;;  %746 = vmatpush1.bf16.msra.mxu0 %v2201_v5 }
 0x23b   :  { %1835 = vmatpush3.bf16.msra.mxu1 %v2221_v12  ;;  %v547_v46 = vcombine.high %v543_v42, %v543_v42  ;;  %559 = vst [vmem:[#allocation8 + $0x19] sm:$0x1] %v546_v45  ;;  %562 = vst [vmem:[#allocation8 + $0x31] sm:$0x1] %v545_v43  ;;  %747 = vmatprep.subr.bf16.mxu0 %v2204_v6 }
 0x23c   :  { %1836 = vmatprep.subr.bf16.mxu1 %v2155_v0 }
 0x23d   :  { %563 = vst [vmem:[#allocation8 + $0x39] sm:$0x1] %v547_v46 }
 0x23e   :  { %748 = vmatpush1.bf16.msra.mxu0 %v2207_v7 }
 0x23f   :  { %1837 = vmatpush3.bf16.msra.mxu1 %v2231_v15  ;;  %749 = vmatprep.subr.bf16.mxu0 %v2210_v8 }
 0x240   :  { %1838 = vmatprep.subr.bf16.mxu1 %v2155_v0 }
 0x242   :  { %750 = vmatpush1.bf16.msra.mxu0 %v2215_v10 }
 0x243   :  { %1839 = vmatpush3.bf16.msra.mxu1 %v2241_v18  ;;  %751 = vmatprep.subr.bf16.mxu0 %v2217_v11 }
 0x244   :  { %1840 = vmatprep.subr.bf16.mxu1 %v2155_v0 }
 0x246   :  { %752 = vmatpush1.bf16.msra.mxu0 %v2224_v13 }
 0x247   :  { %1841 = vmatpush3.bf16.msra.mxu1 %v2251_v21  ;;  %753 = vmatprep.subr.bf16.mxu0 %v2227_v14 }
 0x248   :  { %1842 = vmatprep.subr.bf16.mxu1 %v2155_v0 }
 0x24a   :  { %754 = vmatpush1.bf16.msra.mxu0 %v2235_v16 }
 0x24b   :  { %1843 = vmatpush3.bf16.msra.mxu1 %v2259_v23  ;;  %755 = vmatprep.subr.bf16.mxu0 %v2238_v17 }
 0x24c   :  { %1844 = vmatprep.subr.bf16.mxu1 %v2155_v0 }
 0x24e   :  { %756 = vmatpush1.bf16.msra.mxu0 %v2245_v19 }
 0x24f   :  { %1845 = vmatpush3.bf16.msra.mxu1 %v2264_v24  ;;  %757 = vmatprep.subr.bf16.mxu0 %v2248_v20 }
 0x250   :  { %1846 = vmatprep.subr.bf16.mxu1 %v2155_v0 }
 0x252   :  { %758 = vmatpush1.bf16.msra.mxu0 %v2255_v22 }
 0x253   :  { %1847 = vmatpush3.bf16.msra.mxu1 %v2271_v26  ;;  %917 = vmatprep.subr.bf16.mxu0 %v2193_v2 }
 0x254   :  { %1852 = vmatprep.subr.bf16.mxu1 %v2155_v0 }
 0x2f5   :  { %v603_v48 = vpop.f32.mrf.mxu0 }
 0x2f6   :  { %v644_v49 = vpop.f32.mrf.mxu1  ;;  %v650_v50 = vadd.f32 %v603_v48, %v565_v47 }
 0x2f7   :  { %v605_v51 = vpop.f32.mrf.mxu0  ;;  %v664_v29 = vadd.f32 %v2312_v44, %v644_v49 }
 0x2f8   :  { %v1830_v52 = vpop.f32.mrf.mxu1  ;;  %v1664_v53 = vmul.f32 -1.442695, %v650_v50  ;;  %v657_v59 = vadd.f32 %v605_v51, %v566_v54  ;;  %v739_v54 = vld [vmem:[#allocation3 + $0x48] sm:$0xff] }
 0x2f9   :  { %v607_v55 = vpop.f32.mrf.mxu0 }
 0x2fa   :  { %v647_v56 = vpop.f32.mrf.mxu1  ;;  %1998 = vpow2.f32 %v1664_v53  ;;  %v1665_v60 = vmul.f32 -1.442695, %v657_v59 }
 0x2fb   :  { %v608_v57 = vpop.f32.mrf.mxu0 }
 0x2fc   :  { %v1831_v58 = vpop.f32.mrf.mxu1  ;;  %2000 = vpow2.f32 %v1665_v60 }
 0x307   :  { %v1999_v63 = vpop.eup %1998 }
 0x308   :  { %v654_v25 = vadd.f32 1.0, %v1999_v63  ;;  %v740_v63 = vld [vmem:[#allocation3 + $0x50] sm:$0xff] }
 0x309   :  { %v2001_v27 = vpop.eup %2000 }
 0x30a   :  { %2002 = vrcp.f32 %v654_v25  ;;  %v661_v28 = vadd.f32 1.0, %v2001_v27 }
 0x30c   :  { %2004 = vrcp.f32 %v661_v28 }
 0x317   :  { %v2003_v30 = vpop.eup %2002 }
 0x318   :  { %v665_v33 = vmul.f32 %v2003_v30, %v664_v29 }
 0x319   :  { %v2005_v35 = vpop.eup %2004 }
 0x31a   :  { %v666_v34 = vadd.f32 %v665_v33, %v567_v31  ;;  %v668_v36 = vsub.f32 1.0, %v2005_v35  ;;  %v670_v62 = vmul.f32 %v2005_v35, %v2367_v32 }
 0x31c   :  { %2006 = vtanh.f32 %v666_v34 }
 0x329   :  { %v2007_v37 = vpop.eup %2006 }
 0x32a   :  { %v669_v38 = vmul.f32 %v2007_v37, %v668_v36 }
 0x32c   :  { %v2417_v39 = vadd.f32 %v670_v62, %v669_v38  ;;  %v741_v62 = vld [vmem:[#allocation3 + $0x58] sm:$0xff] }
 0x32e   :  { %v673_v40 = vcombine.high %v2417_v39, %v2417_v39  ;;  %v680_v41 = vrot.slane %v2417_v39, %v2315_v61  ;;  %v742_v42 = vpack.c.bf16 %v2417_v39, %v2417_v39 }
 0x330   :  { %v687_v43 = vrot.slane %v673_v40, %v2315_v61  ;;  %v688_v45 = vcombine.high %v680_v41, %v680_v41  ;;  %v696_v46 = vrot.slane %v680_v41, %v2315_v61  ;;  %1666 = vst.sshfl [vmem:[#allocation8 + $0x2] sm:$0x1 pattern:$0x73625140] %v680_v41  ;;  %776 = vmatmul.mubr.bf16.vlgmr.msra.gmra.mxu0 %v742_v42 }
 0x331   :  { %1849 = vmatmul.mubr.bf16.vlgmr.msra.gmra.mxu1 %v742_v42  ;;  %918 = vmatpush1.bf16.msra.mxu0 %v2195_v3 }
 0x332   :  { %1853 = vmatpush3.bf16.msra.mxu1 %v2212_v9  ;;  %v689_v32 = vcombine.high %v687_v43, %v687_v43  ;;  %v703_v47 = vrot.slane %v687_v43, %v2315_v61  ;;  %v710_v48 = vrot.slane %v688_v45, %v2315_v61  ;;  %v718_v49 = vcombine.high %v696_v46, %v696_v46 }
 0x333   :  { %1667 = vst.sshfl [vmem:[#allocation8 + $0xa] sm:$0x1 pattern:$0x73625140] %v688_v45  ;;  %919 = vmatprep.subr.bf16.mxu0 %v2198_v4  ;;  %1854 = vmatprep.subr.bf16.mxu1 %v2155_v0 }
 0x334   :  { %1668 = vst.sshfl [vmem:[#allocation8 + $0x22] sm:$0x1 pattern:$0x73625140] %v687_v43  ;;  %949 = vmatprep.mubr.bf16.mxu0 %v2156_v1  ;;  %v717_v50 = vrot.slane %v689_v32, %v2315_v61  ;;  %v719_v51 = vcombine.high %v703_v47, %v703_v47  ;;  %v720_v52 = vcombine.high %v710_v48, %v710_v48  ;;  %732 = vst [vmem:[#allocation8 + $0x12] sm:$0x1] %v718_v49 }
 0x335   :  { %1669 = vst.sshfl [vmem:[#allocation8 + $0x2a] sm:$0x1 pattern:$0x73625140] %v689_v32  ;;  %1868 = vmatprep.mubr.msk.bf16.mxu1 %vm2157_vm0, %v2155_v0  ;;  %920 = vmatpush1.bf16.msra.mxu0 %v2201_v5 }
 0x336   :  { %1855 = vmatpush3.bf16.msra.mxu1 %v2221_v12  ;;  %v721_v53 = vcombine.high %v717_v50, %v717_v50  ;;  %733 = vst [vmem:[#allocation8 + $0x1a] sm:$0x1] %v720_v52  ;;  %736 = vst [vmem:[#allocation8 + $0x32] sm:$0x1] %v719_v51  ;;  %921 = vmatprep.subr.bf16.mxu0 %v2204_v6 }
 0x337   :  { %1856 = vmatprep.subr.bf16.mxu1 %v2155_v0 }
 0x338   :  { %737 = vst [vmem:[#allocation8 + $0x3a] sm:$0x1] %v721_v53 }
 0x339   :  { %922 = vmatpush1.bf16.msra.mxu0 %v2207_v7 }
 0x33a   :  { %1857 = vmatpush3.bf16.msra.mxu1 %v2231_v15  ;;  %923 = vmatprep.subr.bf16.mxu0 %v2210_v8 }
 0x33b   :  { %1858 = vmatprep.subr.bf16.mxu1 %v2155_v0 }
 0x33d   :  { %924 = vmatpush1.bf16.msra.mxu0 %v2215_v10 }
 0x33e   :  { %1859 = vmatpush3.bf16.msra.mxu1 %v2241_v18  ;;  %925 = vmatprep.subr.bf16.mxu0 %v2217_v11 }
 0x33f   :  { %1860 = vmatprep.subr.bf16.mxu1 %v2155_v0 }
 0x341   :  { %926 = vmatpush1.bf16.msra.mxu0 %v2224_v13 }
 0x342   :  { %1861 = vmatpush3.bf16.msra.mxu1 %v2251_v21  ;;  %927 = vmatprep.subr.bf16.mxu0 %v2227_v14 }
 0x343   :  { %1862 = vmatprep.subr.bf16.mxu1 %v2155_v0 }
 0x345   :  { %928 = vmatpush1.bf16.msra.mxu0 %v2235_v16 }
 0x346   :  { %1863 = vmatpush3.bf16.msra.mxu1 %v2259_v23  ;;  %929 = vmatprep.subr.bf16.mxu0 %v2238_v17 }
 0x347   :  { %1864 = vmatprep.subr.bf16.mxu1 %v2155_v0 }
 0x349   :  { %930 = vmatpush1.bf16.msra.mxu0 %v2245_v19 }
 0x34a   :  { %1865 = vmatpush3.bf16.msra.mxu1 %v2264_v24  ;;  %931 = vmatprep.subr.bf16.mxu0 %v2248_v20 }
 0x34b   :  { %1866 = vmatprep.subr.bf16.mxu1 %v2155_v0 }
 0x34d   :  { %932 = vmatpush1.bf16.msra.mxu0 %v2255_v22 }
 0x34e   :  { %1867 = vmatpush3.bf16.msra.mxu1 %v2271_v26  ;;  %1091 = vmatprep.subr.bf16.mxu0 %v2193_v2 }
 0x34f   :  { %1872 = vmatprep.subr.bf16.mxu1 %v2155_v0 }
 0x3f0   :  { %v777_v55 = vpop.f32.mrf.mxu0 }
 0x3f1   :  { %v818_v56 = vpop.f32.mrf.mxu1  ;;  %v824_v57 = vadd.f32 %v777_v55, %v739_v54 }
 0x3f2   :  { %v779_v58 = vpop.f32.mrf.mxu0  ;;  %v838_v37 = vadd.f32 %v2312_v44, %v818_v56 }
 0x3f3   :  { %v1850_v59 = vpop.f32.mrf.mxu1  ;;  %v1670_v60 = vmul.f32 -1.442695, %v824_v57  ;;  %v831_v30 = vadd.f32 %v779_v58, %v740_v63 }
 0x3f4   :  { %v781_v25 = vpop.f32.mrf.mxu0 }
 0x3f5   :  { %v821_v27 = vpop.f32.mrf.mxu1  ;;  %2008 = vpow2.f32 %v1670_v60  ;;  %v1671_v31 = vmul.f32 -1.442695, %v831_v30  ;;  %v915_v25 = vld [vmem:[#allocation3 + $0x70] sm:$0xff] }
 0x3f6   :  { %v782_v28 = vpop.f32.mrf.mxu0 }
 0x3f7   :  { %v1851_v29 = vpop.f32.mrf.mxu1  ;;  %2010 = vpow2.f32 %v1671_v31 }
 0x402   :  { %v2009_v33 = vpop.eup %2008 }
 0x403   :  { %v828_v34 = vadd.f32 1.0, %v2009_v33 }
 0x404   :  { %v2011_v35 = vpop.eup %2010 }
 0x405   :  { %2012 = vrcp.f32 %v828_v34  ;;  %v835_v36 = vadd.f32 1.0, %v2011_v35 }
 0x407   :  { %2014 = vrcp.f32 %v835_v36 }
 0x412   :  { %v2013_v38 = vpop.eup %2012 }
 0x413   :  { %v839_v40 = vmul.f32 %v2013_v38, %v838_v37 }
 0x414   :  { %v2015_v42 = vpop.eup %2014 }
 0x415   :  { %v840_v41 = vadd.f32 %v839_v40, %v741_v62  ;;  %v842_v43 = vsub.f32 1.0, %v2015_v42  ;;  %v844_v32 = vmul.f32 %v2015_v42, %v2417_v39  ;;  %v2527_v42 = vld [vmem:[#allocation6 + $0xa8] ss:$12 sps:$4 sm:$0xff]  }
 0x417   :  { %2016 = vtanh.f32 %v840_v41 }
 0x424   :  { %v2017_v45 = vpop.eup %2016 }
 0x425   :  { %v843_v46 = vmul.f32 %v2017_v45, %v842_v43  ;;  %v2530_v43 = vld [vmem:[#allocation6 + $0xb0] ss:$12 sps:$4 sm:$0xff]  }
 0x427   :  { %v2467_v47 = vadd.f32 %v844_v32, %v843_v46 }
 0x429   :  { %v847_v48 = vcombine.high %v2467_v47, %v2467_v47  ;;  %v854_v49 = vrot.slane %v2467_v47, %v2315_v61  ;;  %v916_v50 = vpack.c.bf16 %v2467_v47, %v2467_v47 }
 0x42b   :  { %v861_v51 = vrot.slane %v847_v48, %v2315_v61  ;;  %v862_v52 = vcombine.high %v854_v49, %v854_v49  ;;  %v870_v53 = vrot.slane %v854_v49, %v2315_v61  ;;  %1672 = vst.sshfl [vmem:[#allocation8 + $0x3] sm:$0x1 pattern:$0x73625140] %v854_v49  ;;  %950 = vmatmul.mubr.bf16.vlgmr.msra.gmra.mxu0 %v916_v50  ;;  %v2535_v48 = vld [vmem:[#allocation6 + $0x94] ss:$12 sps:$4 sm:$0xff]  }
 0x42c   :  { %1869 = vmatmul.mubr.bf16.vlgmr.msra.gmra.mxu1 %v916_v50  ;;  %1092 = vmatpush1.bf16.msra.mxu0 %v2195_v3 }
 0x42d   :  { %1873 = vmatpush3.bf16.msra.mxu1 %v2212_v9  ;;  %v863_v39 = vcombine.high %v861_v51, %v861_v51  ;;  %v877_v54 = vrot.slane %v861_v51, %v2315_v61  ;;  %v884_v55 = vrot.slane %v862_v52, %v2315_v61  ;;  %v892_v56 = vcombine.high %v870_v53, %v870_v53  ;;  %v2546_v53 = vld [vmem:[#allocation6 + $0x98] ss:$12 sps:$4 sm:$0xff]  }
 0x42e   :  { %1673 = vst.sshfl [vmem:[#allocation8 + $0xb] sm:$0x1 pattern:$0x73625140] %v862_v52  ;;  %1093 = vmatprep.subr.bf16.mxu0 %v2198_v4  ;;  %1874 = vmatprep.subr.bf16.mxu1 %v2155_v0  ;;  %v913_v4 = vld [vmem:[#allocation3 + $0x60] sm:$0xff] }
 0x42f   :  { %1674 = vst.sshfl [vmem:[#allocation8 + $0x23] sm:$0x1 pattern:$0x73625140] %v861_v51  ;;  %1123 = vmatprep.mubr.bf16.mxu0 %v2156_v1  ;;  %v891_v57 = vrot.slane %v863_v39, %v2315_v61  ;;  %v893_v58 = vcombine.high %v877_v54, %v877_v54  ;;  %v894_v3 = vcombine.high %v884_v55, %v884_v55  ;;  %906 = vst [vmem:[#allocation8 + $0x13] sm:$0x1] %v892_v56 }
 0x430   :  { %1675 = vst.sshfl [vmem:[#allocation8 + $0x2b] sm:$0x1 pattern:$0x73625140] %v863_v39  ;;  %1888 = vmatprep.mubr.msk.bf16.mxu1 %vm2157_vm0, %v2155_v0  ;;  %1094 = vmatpush1.bf16.msra.mxu0 %v2201_v5  ;;  %v2543_v52 = vld [vmem:[#allocation6 + $0x90] ss:$12 sps:$4 sm:$0xff]  }
 0x431   :  { %1875 = vmatpush3.bf16.msra.mxu1 %v2221_v12  ;;  %v895_v9 = vcombine.high %v891_v57, %v891_v57  ;;  %907 = vst [vmem:[#allocation8 + $0x1b] sm:$0x1] %v894_v3  ;;  %910 = vst [vmem:[#allocation8 + $0x33] sm:$0x1] %v893_v58  ;;  %1095 = vmatprep.subr.bf16.mxu0 %v2204_v6  ;;  %v914_v12 = vld [vmem:[#allocation3 + $0x68] sm:$0xff] }
 0x432   :  { %1876 = vmatprep.subr.bf16.mxu1 %v2155_v0  ;;  %v2549_v54 = vld [vmem:[#allocation6 + $0x7c] ss:$12 sps:$4 sm:$0xff]   ;;  %v2553_v55 = vld [vmem:[#allocation6 + $0x78] ss:$12 sps:$4 sm:$0xff]   ;;  %v2556_v56 = vld [vmem:[#allocation6 + $0x80] ss:$12 sps:$4 sm:$0xff]  }
 0x433   :  { %911 = vst [vmem:[#allocation8 + $0x3b] sm:$0x1] %v895_v9  ;;  %v2559_v57 = vld [vmem:[#allocation6 + $0x64] ss:$12 sps:$4 sm:$0xff]   ;;  %v2563_v58 = vld [vmem:[#allocation6 + $0x60] ss:$12 sps:$4 sm:$0xff]  }
 0x434   :  { %1096 = vmatpush1.bf16.msra.mxu0 %v2207_v7  ;;  %v2567_v3 = vld [vmem:[#allocation6 + $0x4c] ss:$12 sps:$4 sm:$0xff]   ;;  %v2571_v9 = vld [vmem:[#allocation6 + $0x48] ss:$12 sps:$4 sm:$0xff]  }
 0x435   :  { %1877 = vmatpush3.bf16.msra.mxu1 %v2231_v15  ;;  %1097 = vmatprep.subr.bf16.mxu0 %v2210_v8 }
 0x436   :  { %1878 = vmatprep.subr.bf16.mxu1 %v2155_v0 }
 0x438   :  { %1098 = vmatpush1.bf16.msra.mxu0 %v2215_v10 }
 0x439   :  { %1879 = vmatpush3.bf16.msra.mxu1 %v2241_v18  ;;  %1099 = vmatprep.subr.bf16.mxu0 %v2217_v11 }
 0x43a   :  { %1880 = vmatprep.subr.bf16.mxu1 %v2155_v0 }
 0x43c   :  { %1100 = vmatpush1.bf16.msra.mxu0 %v2224_v13 }
 0x43d   :  { %1881 = vmatpush3.bf16.msra.mxu1 %v2251_v21  ;;  %1101 = vmatprep.subr.bf16.mxu0 %v2227_v14 }
 0x43e   :  { %1882 = vmatprep.subr.bf16.mxu1 %v2155_v0 }
 0x440   :  { %1102 = vmatpush1.bf16.msra.mxu0 %v2235_v16 }
 0x441   :  { %1883 = vmatpush3.bf16.msra.mxu1 %v2259_v23  ;;  %1103 = vmatprep.subr.bf16.mxu0 %v2238_v17 }
 0x442   :  { %1884 = vmatprep.subr.bf16.mxu1 %v2155_v0 }
 0x444   :  { %1104 = vmatpush1.bf16.msra.mxu0 %v2245_v19 }
 0x445   :  { %1885 = vmatpush3.bf16.msra.mxu1 %v2264_v24  ;;  %1105 = vmatprep.subr.bf16.mxu0 %v2248_v20 }
 0x446   :  { %1886 = vmatprep.subr.bf16.mxu1 %v2155_v0 }
 0x448   :  { %1106 = vmatpush1.bf16.msra.mxu0 %v2255_v22 }
 0x449   :  { %1887 = vmatpush3.bf16.msra.mxu1 %v2271_v26  ;;  %1265 = vmatprep.subr.bf16.mxu0 %v2193_v2 }
 0x44a   :  { %1892 = vmatprep.subr.bf16.mxu1 %v2155_v0 }
 0x4eb   :  { %v951_v5 = vpop.f32.mrf.mxu0 }
 0x4ec   :  { %v992_v6 = vpop.f32.mrf.mxu1  ;;  %v998_v7 = vadd.f32 %v951_v5, %v913_v4  ;;  %v2575_v4 = vld [vmem:[#allocation6 + $0x34] ss:$12 sps:$4 sm:$0xff]   ;;  %v2579_v5 = vld [vmem:[#allocation6 + $0x30] ss:$12 sps:$4 sm:$0xff]  }
 0x4ed   :  { %v953_v8 = vpop.f32.mrf.mxu0  ;;  %v1012_v60 = vadd.f32 %v2312_v44, %v992_v6  ;;  %v2587_v6 = vld [vmem:[#allocation6 + $0x18] ss:$12 sps:$4 sm:$0xff]  }
 0x4ee   :  { %v1870_v10 = vpop.f32.mrf.mxu1  ;;  %v1676_v11 = vmul.f32 -1.442695, %v998_v7  ;;  %v1005_v17 = vadd.f32 %v953_v8, %v914_v12  ;;  %v2595_v7 = vld [vmem:[#allocation6] ss:$12 sps:$4 sm:$0xff]   ;;  %v1087_v8 = vld [vmem:[#allocation3 + $0x78] sm:$0xff] }
 0x4ef   :  { %v955_v13 = vpop.f32.mrf.mxu0 }
 0x4f0   :  { %v995_v14 = vpop.f32.mrf.mxu1  ;;  %2018 = vpow2.f32 %v1676_v11  ;;  %v1677_v19 = vmul.f32 -1.442695, %v1005_v17 }
 0x4f1   :  { %v956_v15 = vpop.f32.mrf.mxu0 }
 0x4f2   :  { %v1871_v16 = vpop.f32.mrf.mxu1  ;;  %2020 = vpow2.f32 %v1677_v19  ;;  %v1088_v15 = vld [vmem:[#allocation3 + $0x80] sm:$0xff] }
 0x4fd   :  { %v2019_v20 = vpop.eup %2018 }
 0x4fe   :  { %v1002_v2 = vadd.f32 1.0, %v2019_v20 }
 0x4ff   :  { %v2021_v22 = vpop.eup %2020 }
 0x500   :  { %2022 = vrcp.f32 %v1002_v2  ;;  %v1009_v59 = vadd.f32 1.0, %v2021_v22 }
 0x502   :  { %2024 = vrcp.f32 %v1009_v59 }
 0x50d   :  { %v2023_v63 = vpop.eup %2022 }
 0x50e   :  { %v1013_v27 = vmul.f32 %v2023_v63, %v1012_v60 }
 0x50f   :  { %v2025_v29 = vpop.eup %2024 }
 0x510   :  { %v1014_v28 = vadd.f32 %v1013_v27, %v915_v25  ;;  %v1016_v30 = vsub.f32 1.0, %v2025_v29  ;;  %v1018_v34 = vmul.f32 %v2025_v29, %v2467_v47 }
 0x512   :  { %2026 = vtanh.f32 %v1014_v28  ;;  %v1089_v28 = vld [vmem:[#allocation3 + $0x88] sm:$0xff] }
 0x51f   :  { %v2027_v31 = vpop.eup %2026 }
 0x520   :  { %v1017_v33 = vmul.f32 %v2027_v31, %v1016_v30 }
 0x522   :  { %v2517_v35 = vadd.f32 %v1018_v34, %v1017_v33 }
 0x524   :  { %v1021_v36 = vcombine.high %v2517_v35, %v2517_v35  ;;  %v1028_v37 = vrot.slane %v2517_v35, %v2315_v61  ;;  %v1090_v38 = vpack.c.bf16 %v2517_v35, %v2517_v35 }
 0x526   :  { %v1035_v62 = vrot.slane %v1021_v36, %v2315_v61  ;;  %v1036_v40 = vcombine.high %v1028_v37, %v1028_v37  ;;  %v1044_v41 = vrot.slane %v1028_v37, %v2315_v61  ;;  %1678 = vst.sshfl [vmem:[#allocation8 + $0x4] sm:$0x1 pattern:$0x73625140] %v1028_v37  ;;  %1124 = vmatmul.mubr.bf16.vlgmr.msra.gmra.mxu0 %v1090_v38 }
 0x527   :  { %1889 = vmatmul.mubr.bf16.vlgmr.msra.gmra.mxu1 %v1090_v38  ;;  %1266 = vmatpush1.bf16.msra.mxu0 %v2527_v42 }
 0x528   :  { %1893 = vmatpush3.bf16.msra.mxu1 %v2530_v43  ;;  %v1037_v45 = vcombine.high %v1035_v62, %v1035_v62  ;;  %v1051_v46 = vrot.slane %v1035_v62, %v2315_v61  ;;  %v1058_v32 = vrot.slane %v1036_v40, %v2315_v61  ;;  %v1066_v47 = vcombine.high %v1044_v41, %v1044_v41 }
 0x529   :  { %1679 = vst.sshfl [vmem:[#allocation8 + $0xc] sm:$0x1 pattern:$0x73625140] %v1036_v40  ;;  %1267 = vmatprep.subr.bf16.mxu0 %v2535_v48  ;;  %1894 = vmatprep.subr.bf16.mxu1 %v2155_v0 }
 0x52a   :  { %1680 = vst.sshfl [vmem:[#allocation8 + $0x24] sm:$0x1 pattern:$0x73625140] %v1035_v62  ;;  %1297 = vmatprep.mubr.bf16.mxu0 %v2156_v1  ;;  %v1065_v49 = vrot.slane %v1037_v45, %v2315_v61  ;;  %v1067_v50 = vcombine.high %v1051_v46, %v1051_v46  ;;  %v1068_v51 = vcombine.high %v1058_v32, %v1058_v32  ;;  %1080 = vst [vmem:[#allocation8 + $0x14] sm:$0x1] %v1066_v47 }
 0x52b   :  { %1681 = vst.sshfl [vmem:[#allocation8 + $0x2c] sm:$0x1 pattern:$0x73625140] %v1037_v45  ;;  %1908 = vmatprep.mubr.msk.bf16.mxu1 %vm2157_vm0, %v2155_v0  ;;  %1268 = vmatpush1.bf16.msra.mxu0 %v2543_v52 }
 0x52c   :  { %1895 = vmatpush3.bf16.msra.mxu1 %v2546_v53  ;;  %v1069_v39 = vcombine.high %v1065_v49, %v1065_v49  ;;  %1081 = vst [vmem:[#allocation8 + $0x1c] sm:$0x1] %v1068_v51  ;;  %1084 = vst [vmem:[#allocation8 + $0x34] sm:$0x1] %v1067_v50  ;;  %1269 = vmatprep.subr.bf16.mxu0 %v2549_v54 }
 0x52d   :  { %1896 = vmatprep.subr.bf16.mxu1 %v2155_v0 }
 0x52e   :  { %1085 = vst [vmem:[#allocation8 + $0x3c] sm:$0x1] %v1069_v39  ;;  %v2081_v39 = vld [vmem:[#allocation6 + $0x8] ss:$12 sps:$4 sm:$0xff]  }
 0x52f   :  { %1270 = vmatpush1.bf16.msra.mxu0 %v2553_v55 }
 0x530   :  { %1897 = vmatpush3.bf16.msra.mxu1 %v2556_v56  ;;  %1271 = vmatprep.subr.bf16.mxu0 %v2559_v57 }
 0x531   :  { %1898 = vmatprep.subr.bf16.mxu1 %v2155_v0 }
 0x533   :  { %1272 = vmatpush1.bf16.msra.mxu0 %v2563_v58 }
 0x534   :  { %1899 = vmatpush3.bf16.msra.mxu1 %v2241_v18  ;;  %1273 = vmatprep.subr.bf16.mxu0 %v2567_v3  ;;  %v2583_v18 = vld [vmem:[#allocation6 + $0x1c] ss:$12 sps:$4 sm:$0xff]  }
 0x535   :  { %1900 = vmatprep.subr.bf16.mxu1 %v2155_v0 }
 0x537   :  { %1274 = vmatpush1.bf16.msra.mxu0 %v2571_v9 }
 0x538   :  { %1901 = vmatpush3.bf16.msra.mxu1 %v2251_v21  ;;  %1275 = vmatprep.subr.bf16.mxu0 %v2575_v4  ;;  %v2591_v21 = vld [vmem:[#allocation6 + $0x4] ss:$12 sps:$4 sm:$0xff]  }
 0x539   :  { %1902 = vmatprep.subr.bf16.mxu1 %v2155_v0 }
 0x53b   :  { %1276 = vmatpush1.bf16.msra.mxu0 %v2579_v5 }
 0x53c   :  { %1903 = vmatpush3.bf16.msra.mxu1 %v2259_v23  ;;  %1277 = vmatprep.subr.bf16.mxu0 %v2583_v18  ;;  %v2076_v23 = vld [vmem:[#allocation6 + $0xac] ss:$12 sps:$4 sm:$0xff]  }
 0x53d   :  { %1904 = vmatprep.subr.bf16.mxu1 %v2155_v0 }
 0x53f   :  { %1278 = vmatpush1.bf16.msra.mxu0 %v2587_v6 }
 0x540   :  { %1905 = vmatpush3.bf16.msra.mxu1 %v2264_v24  ;;  %1279 = vmatprep.subr.bf16.mxu0 %v2591_v21 }
 0x541   :  { %1906 = vmatprep.subr.bf16.mxu1 %v2155_v0 }
 0x543   :  { %1280 = vmatpush1.bf16.msra.mxu0 %v2595_v7 }
 0x544   :  { %1907 = vmatpush3.bf16.msra.mxu1 %v2271_v26  ;;  %1439 = vmatprep.subr.bf16.mxu0 %v2076_v23 }
 0x545   :  { %1912 = vmatprep.subr.bf16.mxu1 %v2155_v0 }
 0x5e6   :  { %v1125_v10 = vpop.f32.mrf.mxu0 }
 0x5e7   :  { %v1166_v11 = vpop.f32.mrf.mxu1  ;;  %v1172_v24 = vadd.f32 %v1125_v10, %v1087_v8 }
 0x5e8   :  { %v1127_v12 = vpop.f32.mrf.mxu0  ;;  %v1186_v25 = vadd.f32 %v2312_v44, %v1166_v11 }
 0x5e9   :  { %v1890_v13 = vpop.f32.mrf.mxu1  ;;  %v1682_v14 = vmul.f32 -1.442695, %v1172_v24  ;;  %v1179_v2 = vadd.f32 %v1127_v12, %v1088_v15  ;;  %v2082_v24 = vld [vmem:[%s2664_s2] ss:$0 sm:$0xff]  ;;  %s2160_s2 = smov [#allocation8]  }
 0x5ea   :  { %v1129_v16 = vpop.f32.mrf.mxu0  ;;  %s1614_s28 = sshll.u32 %s2160_s2, 4  ;;  %s1615_s28 = int_to_ptr.vmem [resolvable:$true] %s1614_s28 }
 0x5eb   :  { %v1169_v17 = vpop.f32.mrf.mxu1  ;;  %2028 = vpow2.f32 %v1682_v14  ;;  %v1683_v22 = vmul.f32 -1.442695, %v1179_v2  ;;  %v1263_v14 = vld [vmem:[#allocation3 + $0xa0] sm:$0xff]  ;;  %s2123_s29 = scalar_lea.vmem %s1615_s28, 1024  ;;  %p2128_p11 = scmp.lt.s32.totalorder %s1615_s28, %s1615_s28 }
 0x5ec   :  { %v1130_v19 = vpop.f32.mrf.mxu0  ;;  %p2124_p10 = scmp.ne.s32.totalorder %s1615_s28, %s2123_s29  ;;  %p2129_p12 = scmp.lt.s32.totalorder %s2123_s29, %s2123_s29 }
 0x5ed   :  { %v1891_v20 = vpop.f32.mrf.mxu1  ;;  %2030 = vpow2.f32 %v1683_v22 }
 0x5ee   :  { %p2130_p13 = por %p2129_p12, %p2128_p11 }
 0x5f0   :  { %p2131_p0 = pnand %p2130_p13, %p2124_p10 }
 0x5f8   :  { %v2029_v26 = vpop.eup %2028 }
 0x5f9   :  { %v1176_v59 = vadd.f32 1.0, %v2029_v26 }
 0x5fa   :  { %v2031_v60 = vpop.eup %2030 }
 0x5fb   :  { %2032 = vrcp.f32 %v1176_v59  ;;  %v1183_v63 = vadd.f32 1.0, %v2031_v60 }
 0x5fd   :  { %2034 = vrcp.f32 %v1183_v63 }
 0x608   :  { %v2033_v27 = vpop.eup %2032 }
 0x609   :  { %v1187_v29 = vmul.f32 %v2033_v27, %v1186_v25 }
 0x60a   :  { %v2035_v31 = vpop.eup %2034 }
 0x60b   :  { %v1188_v30 = vadd.f32 %v1187_v29, %v1089_v28  ;;  %v1190_v33 = vsub.f32 1.0, %v2035_v31  ;;  %v1192_v37 = vmul.f32 %v2035_v31, %v2517_v35 }
 0x60d   :  { %2036 = vtanh.f32 %v1188_v30 }
 0x61a   :  { %v2037_v34 = vpop.eup %2036 }
 0x61b   :  { %v1191_v36 = vmul.f32 %v2037_v34, %v1190_v33 }
 0x61d   :  { %v2602_v38 = vadd.f32 %v1192_v37, %v1191_v36 }
 0x61f   :  { %v1195_v62 = vcombine.high %v2602_v38, %v2602_v38  ;;  %v1202_v44 = vrot.slane %v2602_v38, %v2315_v61  ;;  %v1264_v40 = vpack.c.bf16 %v2602_v38, %v2602_v38 }
 0x621   :  { %v1209_v41 = vrot.slane %v1195_v62, %v2315_v61  ;;  %v1210_v45 = vcombine.high %v1202_v44, %v1202_v44  ;;  %v1218_v46 = vrot.slane %v1202_v44, %v2315_v61  ;;  %1684 = vst.sshfl [vmem:[#allocation8 + $0x5] sm:$0x1 pattern:$0x73625140] %v1202_v44  ;;  %1298 = vmatmul.mubr.bf16.vlgmr.msra.gmra.mxu0 %v1264_v40  ;;  %v1435_v62 = vld [vmem:[#allocation3 + $0xa8] sm:$0xff] }
 0x622   :  { %1909 = vmatmul.mubr.bf16.vlgmr.msra.gmra.mxu1 %v1264_v40  ;;  %1440 = vmatpush1.bf16.msra.mxu0 %v2527_v42 }
 0x623   :  { %1913 = vmatpush3.bf16.msra.mxu1 %v2530_v43  ;;  %v1211_v35 = vcombine.high %v1209_v41, %v1209_v41  ;;  %v1225_v32 = vrot.slane %v1209_v41, %v2315_v61  ;;  %v1232_v47 = vrot.slane %v1210_v45, %v2315_v61  ;;  %v1240_v49 = vcombine.high %v1218_v46, %v1218_v46 }
 0x624   :  { %1685 = vst.sshfl [vmem:[#allocation8 + $0xd] sm:$0x1 pattern:$0x73625140] %v1210_v45  ;;  %1441 = vmatprep.subr.bf16.mxu0 %v2535_v48  ;;  %1914 = vmatprep.subr.bf16.mxu1 %v2155_v0  ;;  %v2078_v48 = vld [vmem:[#allocation6 + $0x50] ss:$12 sps:$4 sm:$0xff]  }
 0x625   :  { %1686 = vst.sshfl [vmem:[#allocation8 + $0x25] sm:$0x1 pattern:$0x73625140] %v1209_v41  ;;  %1471 = vmatprep.mubr.bf16.mxu0 %v2156_v1  ;;  %v1239_v50 = vrot.slane %v1211_v35, %v2315_v61  ;;  %v1241_v51 = vcombine.high %v1225_v32, %v1225_v32  ;;  %v1242_v42 = vcombine.high %v1232_v47, %v1232_v47  ;;  %1254 = vst [vmem:[#allocation8 + $0x15] sm:$0x1] %v1240_v49 }
 0x626   :  { %1687 = vst.sshfl [vmem:[#allocation8 + $0x2d] sm:$0x1 pattern:$0x73625140] %v1211_v35  ;;  %1928 = vmatprep.mubr.msk.bf16.mxu1 %vm2157_vm0, %v2155_v0  ;;  %1442 = vmatpush1.bf16.msra.mxu0 %v2543_v52  ;;  %v2077_v1 = vld [vmem:[#allocation6 + $0x68] ss:$12 sps:$4 sm:$0xff]  }
 0x627   :  { %1915 = vmatpush3.bf16.msra.mxu1 %v2546_v53  ;;  %v1243_v43 = vcombine.high %v1239_v50, %v1239_v50  ;;  %1255 = vst [vmem:[#allocation8 + $0x1d] sm:$0x1] %v1242_v42  ;;  %1258 = vst [vmem:[#allocation8 + $0x35] sm:$0x1] %v1241_v51  ;;  %1443 = vmatprep.subr.bf16.mxu0 %v2549_v54  ;;  %v2079_v52 = vld [vmem:[#allocation6 + $0x38] ss:$12 sps:$4 sm:$0xff]  }
 0x628   :  { %1916 = vmatprep.subr.bf16.mxu1 %v2155_v0  ;;  %v2080_v53 = vld [vmem:[#allocation6 + $0x20] ss:$12 sps:$4 sm:$0xff]   ;;  %v1261_v54 = vld [vmem:[#allocation3 + $0x90] sm:$0xff] }
 0x629   :  { %1259 = vst [vmem:[#allocation8 + $0x3d] sm:$0x1] %v1243_v43  ;;  %v1436_v32 = vld [vmem:[#allocation3 + $0xb0] sm:$0xff] }
 0x62a   :  { %1444 = vmatpush1.bf16.msra.mxu0 %v2553_v55 }
 0x62b   :  { %1917 = vmatpush3.bf16.msra.mxu1 %v2556_v56  ;;  %1445 = vmatprep.subr.bf16.mxu0 %v2559_v57 }
 0x62c   :  { %1918 = vmatprep.subr.bf16.mxu1 %v2155_v0 }
 0x62e   :  { %1446 = vmatpush1.bf16.msra.mxu0 %v2563_v58 }
 0x62f   :  { %1919 = vmatpush3.bf16.msra.mxu1 %v2077_v1  ;;  %1447 = vmatprep.subr.bf16.mxu0 %v2567_v3 }
 0x630   :  { %1920 = vmatprep.subr.bf16.mxu1 %v2155_v0 }
 0x632   :  { %1448 = vmatpush1.bf16.msra.mxu0 %v2571_v9 }
 0x633   :  { %1921 = vmatpush3.bf16.msra.mxu1 %v2078_v48  ;;  %1449 = vmatprep.subr.bf16.mxu0 %v2575_v4  ;;  %v1262_v4 = vld [vmem:[#allocation3 + $0x98] sm:$0xff] }
 0x634   :  { %1922 = vmatprep.subr.bf16.mxu1 %v2155_v0 }
 0x636   :  { %1450 = vmatpush1.bf16.msra.mxu0 %v2579_v5 }
 0x637   :  { %1923 = vmatpush3.bf16.msra.mxu1 %v2079_v52  ;;  %1451 = vmatprep.subr.bf16.mxu0 %v2583_v18 }
 0x638   :  { %1924 = vmatprep.subr.bf16.mxu1 %v2155_v0 }
 0x63a   :  { %1452 = vmatpush1.bf16.msra.mxu0 %v2587_v6 }
 0x63b   :  { %1925 = vmatpush3.bf16.msra.mxu1 %v2080_v53  ;;  %1453 = vmatprep.subr.bf16.mxu0 %v2591_v21 }
 0x63c   :  { %1926 = vmatprep.subr.bf16.mxu1 %v2155_v0 }
 0x63e   :  { %1454 = vmatpush1.bf16.msra.mxu0 %v2595_v7 }
 0x63f   :  { %1927 = vmatpush3.bf16.msra.mxu1 %v2081_v39 }
 0x6e1   :  { %v1299_v55 = vpop.f32.mrf.mxu0 }
 0x6e2   :  { %v1340_v56 = vpop.f32.mrf.mxu1  ;;  %v1346_v57 = vadd.f32 %v1299_v55, %v1261_v54  ;;  %v1437_v55 = vld [vmem:[#allocation3 + $0xb8] sm:$0xff] }
 0x6e3   :  { %v1301_v58 = vpop.f32.mrf.mxu0  ;;  %v1360_v12 = vadd.f32 %v2082_v24, %v1340_v56 }
 0x6e4   :  { %v1910_v3 = vpop.f32.mrf.mxu1  ;;  %v1688_v9 = vmul.f32 -1.442695, %v1346_v57  ;;  %v1353_v21 = vadd.f32 %v1301_v58, %v1262_v4 }
 0x6e5   :  { %v1303_v5 = vpop.f32.mrf.mxu0 }
 0x6e6   :  { %v1343_v18 = vpop.f32.mrf.mxu1  ;;  %2038 = vpow2.f32 %v1688_v9  ;;  %v1689_v8 = vmul.f32 -1.442695, %v1353_v21 }
 0x6e7   :  { %v1304_v6 = vpop.f32.mrf.mxu0 }
 0x6e8   :  { %v1911_v23 = vpop.f32.mrf.mxu1  ;;  %2040 = vpow2.f32 %v1689_v8 }
 0x6f3   :  { %v2039_v0 = vpop.eup %2038 }
 0x6f4   :  { %v1350_v7 = vadd.f32 1.0, %v2039_v0 }
 0x6f5   :  { %v2041_v10 = vpop.eup %2040 }
 0x6f6   :  { %2042 = vrcp.f32 %v1350_v7  ;;  %v1357_v11 = vadd.f32 1.0, %v2041_v10 }
 0x6f8   :  { %2044 = vrcp.f32 %v1357_v11 }
 0x703   :  { %v2043_v13 = vpop.eup %2042 }
 0x704   :  { %v1361_v15 = vmul.f32 %v2043_v13, %v1360_v12 }
 0x705   :  { %v2045_v17 = vpop.eup %2044 }
 0x706   :  { %v1362_v16 = vadd.f32 %v1361_v15, %v1263_v14  ;;  %v1364_v19 = vsub.f32 1.0, %v2045_v17  ;;  %v1366_v22 = vmul.f32 %v2045_v17, %v2602_v38 }
 0x708   :  { %2046 = vtanh.f32 %v1362_v16 }
 0x715   :  { %v2047_v20 = vpop.eup %2046 }
 0x716   :  { %v1365_v2 = vmul.f32 %v2047_v20, %v1364_v19 }
 0x718   :  { %v1367_v26 = vadd.f32 %v1366_v22, %v1365_v2 }
 0x71a   :  { %v1369_v59 = vcombine.high %v1367_v26, %v1367_v26  ;;  %v1376_v60 = vrot.slane %v1367_v26, %v2315_v61  ;;  %v1438_v63 = vpack.c.bf16 %v1367_v26, %v1367_v26 }
 0x71c   :  { %v1383_v25 = vrot.slane %v1369_v59, %v2315_v61  ;;  %v1384_v27 = vcombine.high %v1376_v60, %v1376_v60  ;;  %v1392_v28 = vrot.slane %v1376_v60, %v2315_v61  ;;  %1690 = vst.sshfl [vmem:[#allocation8 + $0x6] sm:$0x1 pattern:$0x73625140] %v1376_v60  ;;  %1472 = vmatmul.mubr.bf16.vlgmr.msra.gmra.mxu0 %v1438_v63 }
 0x71d   :  { %1929 = vmatmul.mubr.bf16.vlgmr.msra.gmra.mxu1 %v1438_v63 }
 0x71e   :  { %v1385_v29 = vcombine.high %v1383_v25, %v1383_v25  ;;  %v1399_v30 = vrot.slane %v1383_v25, %v2315_v61  ;;  %v1406_v31 = vrot.slane %v1384_v27, %v2315_v61  ;;  %v1414_v33 = vcombine.high %v1392_v28, %v1392_v28  ;;  %1691 = vst.sshfl [vmem:[#allocation8 + $0xe] sm:$0x1 pattern:$0x73625140] %v1384_v27 }
 0x71f   :  { %1692 = vst.sshfl [vmem:[#allocation8 + $0x26] sm:$0x1 pattern:$0x73625140] %v1383_v25 }
 0x720   :  { %v1413_v34 = vrot.slane %v1385_v29, %v2315_v61  ;;  %v1415_v36 = vcombine.high %v1399_v30, %v1399_v30  ;;  %v1416_v37 = vcombine.high %v1406_v31, %v1406_v31  ;;  %1428 = vst [vmem:[#allocation8 + $0x16] sm:$0x1] %v1414_v33  ;;  %1693 = vst.sshfl [vmem:[#allocation8 + $0x2e] sm:$0x1 pattern:$0x73625140] %v1385_v29 }
 0x722   :  { %v1417_v38 = vcombine.high %v1413_v34, %v1413_v34  ;;  %1429 = vst [vmem:[#allocation8 + $0x1e] sm:$0x1] %v1416_v37  ;;  %1432 = vst [vmem:[#allocation8 + $0x36] sm:$0x1] %v1415_v36 }
 0x724   :  { %1433 = vst [vmem:[#allocation8 + $0x3e] sm:$0x1] %v1417_v38 }
 0x7dc   :  { %v1473_v44 = vpop.f32.mrf.mxu0 }
 0x7dd   :  { %v1514_v40 = vpop.f32.mrf.mxu1  ;;  %v1520_v41 = vadd.f32 %v1473_v44, %v1435_v62 }
 0x7de   :  { %v1475_v45 = vpop.f32.mrf.mxu0  ;;  %v1534_v39 = vadd.f32 %v2082_v24, %v1514_v40 }
 0x7df   :  { %v1930_v46 = vpop.f32.mrf.mxu1  ;;  %v1694_v35 = vmul.f32 -1.442695, %v1520_v41  ;;  %v1527_v42 = vadd.f32 %v1475_v45, %v1436_v32 }
 0x7e0   :  { %v1477_v47 = vpop.f32.mrf.mxu0 }
 0x7e1   :  { %v1517_v49 = vpop.f32.mrf.mxu1  ;;  %2048 = vpow2.f32 %v1694_v35  ;;  %v1695_v43 = vmul.f32 -1.442695, %v1527_v42 }
 0x7e2   :  { %v1478_v50 = vpop.f32.mrf.mxu0 }
 0x7e3   :  { %v1931_v51 = vpop.f32.mrf.mxu1  ;;  %2050 = vpow2.f32 %v1695_v43 }
 0x7ee   :  { %v2049_v1 = vpop.eup %2048 }
 0x7ef   :  { %v1524_v48 = vadd.f32 1.0, %v2049_v1 }
 0x7f0   :  { %v2051_v52 = vpop.eup %2050 }
 0x7f1   :  { %2052 = vrcp.f32 %v1524_v48  ;;  %v1531_v53 = vadd.f32 1.0, %v2051_v52 }
 0x7f3   :  { %2054 = vrcp.f32 %v1531_v53 }
 0x7fe   :  { %v2053_v54 = vpop.eup %2052 }
 0x7ff   :  { %v1535_v56 = vmul.f32 %v2053_v54, %v1534_v39 }
 0x800   :  { %v2055_v58 = vpop.eup %2054 }
 0x801   :  { %v1536_v57 = vadd.f32 %v1535_v56, %v1437_v55  ;;  %v1538_v3 = vsub.f32 1.0, %v2055_v58  ;;  %v1540_v5 = vmul.f32 %v2055_v58, %v1367_v26 }
 0x803   :  { %2056 = vtanh.f32 %v1536_v57 }
 0x810   :  { %v2057_v9 = vpop.eup %2056 }
 0x811   :  { %v1539_v4 = vmul.f32 %v2057_v9, %v1538_v3 }
 0x813   :  { %v1541_v18 = vadd.f32 %v1540_v5, %v1539_v4 }
 0x815   :  { %v1543_v6 = vcombine.high %v1541_v18, %v1541_v18  ;;  %v1550_v23 = vrot.slane %v1541_v18, %v2315_v61 }
 0x817   :  { %v1557_v21 = vrot.slane %v1543_v6, %v2315_v61  ;;  %v1558_v8 = vcombine.high %v1550_v23, %v1550_v23  ;;  %v1566_v0 = vrot.slane %v1550_v23, %v2315_v61  ;;  %1696 = vst.sshfl [vmem:[#allocation8 + $0x7] sm:$0x1 pattern:$0x73625140] %v1550_v23 }
 0x819   :  { %v1559_v7 = vcombine.high %v1557_v21, %v1557_v21  ;;  %v1573_v10 = vrot.slane %v1557_v21, %v2315_v61  ;;  %v1580_v11 = vrot.slane %v1558_v8, %v2315_v61  ;;  %v1588_v24 = vcombine.high %v1566_v0, %v1566_v0  ;;  %1697 = vst.sshfl [vmem:[#allocation8 + $0xf] sm:$0x1 pattern:$0x73625140] %v1558_v8 }
 0x81a   :  { %1698 = vst.sshfl [vmem:[#allocation8 + $0x27] sm:$0x1 pattern:$0x73625140] %v1557_v21 }
 0x81b   :  { %v1587_v12 = vrot.slane %v1559_v7, %v2315_v61  ;;  %v1589_v13 = vcombine.high %v1573_v10, %v1573_v10  ;;  %v1590_v14 = vcombine.high %v1580_v11, %v1580_v11  ;;  %1602 = vst [vmem:[#allocation8 + $0x17] sm:$0x1] %v1588_v24  ;;  %1699 = vst.sshfl [vmem:[#allocation8 + $0x2f] sm:$0x1 pattern:$0x73625140] %v1559_v7 }
 0x81d   :  { %v1591_v15 = vcombine.high %v1587_v12, %v1587_v12  ;;  %1603 = vst [vmem:[#allocation8 + $0x1f] sm:$0x1] %v1590_v14  ;;  %1606 = vst [vmem:[#allocation8 + $0x37] sm:$0x1] %v1589_v13 }
 0x81f   :  { %1607 = vst [vmem:[#allocation8 + $0x3f] sm:$0x1] %v1591_v15 }
 0x820   :  { %2134 = shalt.err (!%p2131_p0)
}
 0x821   :  { %s2161_s30 = smov 128   ;;  %s2162_s4 = smov 8  }
 0x822   :  { %1620 = dma.vmem_to_hbm [thread:$0]  %s1615_s28, 1024, %s2665_s3, [#allocation5], %s2161_s30, %s2161_s30, %s2162_s4  }
 0x823   :  { %2147 = dma.done.wait [#allocation5], 1024  }
 0x824   :  { %2148 = vsyncadd [#allocation5], 4294966272 }
 0x825   :  { %1624 = vsyncpa [#allocation4], 1 }
 0x826   :  { %1625 = vsyncpa [#allocation7], 1 }
 0x827   :  { %1626 = vsyncpa [#allocation5], 1 }

</bundles_post_ra>
